<compile_context>
chip_gen: v7x
topology: tpu7x:2x2x1
jax: 0.10.0
libtpu: 0.0.40
codegen_flags: <defaults>
</compile_context>

<pallas_src>
import jax
import jax.numpy as jnp
from jax.experimental import pallas as pl
from jax.experimental.pallas import tpu as pltpu

_VMEM_LIMIT_BYTES = 32 * 1024 * 1024

# Memoized: does this jax build accept pipeline_mode=pl.Buffered(1)?
_SINGLE_BUFFER_OK = None


# --------------------------------------------------------------------------
# Kernels
# --------------------------------------------------------------------------

def _fused_affine_kernel(x_ref, w_ref, b_ref, o_ref):
    """y = x @ W + b  (single MXU GEMM, f32 accumulation).

    The operand cast happens in-kernel (VPU op hidden under the x DMA) so the
    wrapper never writes a casted copy of x back to HBM.
    """
    x = x_ref[...].astype(w_ref.dtype)
    acc = jnp.dot(x, w_ref[...], preferred_element_type=jnp.float32)
    o_ref[...] = (acc + b_ref[...]).astype(o_ref.dtype)


def _sequential_affine_kernel(x_ref, w1_ref, b1_ref, w2_ref, b2_ref, o_ref):
    """y = (x @ W1 + b1) @ W2 + b2 applied sequentially inside one kernel.

    Kept for composites whose sub-transforms are not all affine.  Biases are
    added in f32; the intermediate is cast back to the operand dtype so the
    second matmul also hits the MXU fast path when bf16 compute is used
    (NOTE: that compounds rounding vs f32 — see tests).
    """
    x = x_ref[...].astype(w1_ref.dtype)
    h = jnp.dot(x, w1_ref[...], preferred_element_type=jnp.float32)
    h = (h + b1_ref[...]).astype(w2_ref.dtype)
    y = jnp.dot(h, w2_ref[...], preferred_element_type=jnp.float32)
    o_ref[...] = (y + b2_ref[...]).astype(o_ref.dtype)


# --------------------------------------------------------------------------
# Spec / tiling helpers
# --------------------------------------------------------------------------

def _pick_bm(batch, bm):
    """Whole batch in one step when it fits the requested tile (avoids
    splitting a tiny latency-bound problem across v7x's 2 TCs with nothing to
    pipeline); otherwise an 8-row-aligned batch tile."""
    if batch <= bm:
        return batch
    return max(8, bm - (bm % 8))


def _const_spec(shape, single_buffer):
    """BlockSpec for a block whose index_map is constant (resident block)."""
    idx = lambda i: (0,) * len(shape)
    if single_buffer:
        # The block never changes across grid steps -> the default second
        # pipeline buffer is wasted VMEM.
        return pl.BlockSpec(shape, idx, pipeline_mode=pl.Buffered(1))
    return pl.BlockSpec(shape, idx)


def _with_single_buffer_fallback(call):
    """Run `call(True)` (Buffered(1) resident specs); fall back to the default
    double-buffered specs if this jax build rejects pipeline_mode here."""
    global _SINGLE_BUFFER_OK
    if _SINGLE_BUFFER_OK is not False:
        try:
            out = call(True)
            _SINGLE_BUFFER_OK = True
            return out
        except Exception:
            _SINGLE_BUFFER_OK = False
    return call(False)


# --------------------------------------------------------------------------
# Wrappers
# --------------------------------------------------------------------------

def fuse_affine_params(w1, b1, w2, b2, *, compute_dtype=None):
    """Collapse two affine sub-transforms into one:
         (x @ W1 + b1) @ W2 + b2  ==  x @ (W1 @ W2) + (b1 @ W2 + b2)

    Call ONCE per weight set (or under jit where it constant-folds) and reuse
    the result across composite_forward_fused calls — the per-call fusion GEMM
    otherwise rivals the kernel cost at small D.  The fused bias stays f32
    (it is added into the f32 accumulator in-kernel).  NOTE: quantizing the
    already-multiplied W1@W2 to bf16 compounds rounding vs a sequential bf16
    chain; callers needing tighter error should fuse in f32.
    """
    hi = jax.lax.Precision.HIGHEST
    w1f = w1.astype(jnp.float32)
    w2f = w2.astype(jnp.float32)
    b1f = jnp.reshape(b1, (1, -1)).astype(jnp.float32)
    b2f = jnp.reshape(b2, (1, -1)).astype(jnp.float32)
    w = jnp.dot(w1f, w2f, precision=hi)
    b = jnp.dot(b1f, w2f, precision=hi) + b2f
    if compute_dtype is not None:
        w = w.astype(compute_dtype)
    return w, b


def composite_forward_fused(x, w, b, *, bm=1024, out_dtype=None):
    """Fused composite forward: y = x @ W + b, with (W, b) from
    fuse_affine_params.  x: [B, D]; W: [D, Dout]; b: [1, Dout] (f32).

    bm: batch tile.  Sweep 512..2048 (a 2048x128 f32 tile is 1 MiB; double-
        buffered x + out is ~4 MiB -> far inside the 32 MiB VMEM limit and
        v7x's 64 MiB physical VMEM).  On v7x keep bm <= B/4 so each of the two
        TensorCores gets >= 2 pipelined grid steps; on v5e (single TC) simply
        maximize bm.  Batches that fit one tile run as a single grid step.
    out_dtype: defaults to x.dtype; pass bf16 to halve output HBM traffic when
        the consumer accepts it.
    Ragged batches need no padding: the partial last block is masked by Pallas.
    """
    B, D = x.shape
    d_in, d_out = w.shape
    assert d_in == D, f"fused W shape {w.shape} incompatible with x {x.shape}"
    b = jnp.reshape(b, (1, d_out)).astype(jnp.float32)
    out_dtype = x.dtype if out_dtype is None else out_dtype

    bm = _pick_bm(B, bm)
    n_blocks = pl.cdiv(B, bm)

    cost = pl.CostEstimate(
        flops=2 * B * D * d_out,
        transcendentals=0,
        bytes_accessed=(B * D * x.dtype.itemsize
                        + D * d_out * w.dtype.itemsize
                        + d_out * 4
                        + B * d_out * jnp.dtype(out_dtype).itemsize),
    )
    compiler_params = pltpu.CompilerParams(
        dimension_semantics=("parallel",),      # batch axis -> both v7x TCs
        vmem_limit_bytes=_VMEM_LIMIT_BYTES,
    )

    def call(single_buffer):
        return pl.pallas_call(
            _fused_affine_kernel,
            out_shape=jax.ShapeDtypeStruct((B, d_out), out_dtype),
            grid_spec=pltpu.PrefetchScalarGridSpec(
                num_scalar_prefetch=0,
                grid=(n_blocks,),
                in_specs=[
                    pl.BlockSpec((bm, D), lambda i: (i, 0)),      # x (streamed)
                    _const_spec((D, d_out), single_buffer),       # fused W
                    _const_spec((1, d_out), single_buffer),       # fused b
                ],
                out_specs=pl.BlockSpec((bm, d_out), lambda i: (i, 0)),
            ),
            compiler_params=compiler_params,
            cost_estimate=cost,
        )(x, w, b)

    return _with_single_buffer_fallback(call)


def composite_forward_sequential(x, w1, b1, w2, b2, *, bm=1024,
                                 compute_dtype=None, out_dtype=None):
    """General composite forward: y = (x @ W1 + b1) @ W2 + b2 with both
    matmuls inside one kernel (pattern for non-affine sub-transform chains).
    Weight/bias casts are wrapper-side (tiny); the activation cast is in-kernel.
    """
    B, D = x.shape
    d_in, H = w1.shape
    h_in, d_out = w2.shape
    assert d_in == D and h_in == H, "weight shapes do not chain"
    out_dtype = x.dtype if out_dtype is None else out_dtype
    compute_dtype = x.dtype if compute_dtype is None else compute_dtype

    w1c = w1.astype(compute_dtype)
    w2c = w2.astype(compute_dtype)
    b1f = jnp.reshape(b1, (1, H)).astype(jnp.float32)
    b2f = jnp.reshape(b2, (1, d_out)).astype(jnp.float32)

    bm = _pick_bm(B, bm)
    n_blocks = pl.cdiv(B, bm)
    itm = jnp.dtype(compute_dtype).itemsize

    cost = pl.CostEstimate(
        flops=2 * B * D * H + 2 * B * H * d_out,
        transcendentals=0,
        bytes_accessed=(B * D * x.dtype.itemsize
                        + D * H * itm + H * d_out * itm
                        + (H + d_out) * 4
                        + B * d_out * jnp.dtype(out_dtype).itemsize),
    )
    compiler_params = pltpu.CompilerParams(
        dimension_semantics=("parallel",),
        vmem_limit_bytes=_VMEM_LIMIT_BYTES,
    )

    def call(single_buffer):
        return pl.pallas_call(
            _sequential_affine_kernel,
            out_shape=jax.ShapeDtypeStruct((B, d_out), out_dtype),
            grid_spec=pltpu.PrefetchScalarGridSpec(
                num_scalar_prefetch=0,
                grid=(n_blocks,),
                in_specs=[
                    pl.BlockSpec((bm, D), lambda i: (i, 0)),      # x (streamed)
                    _const_spec((D, H), single_buffer),           # W1 (resident)
                    _const_spec((1, H), single_buffer),           # b1
                    _const_spec((H, d_out), single_buffer),       # W2 (resident)
                    _const_spec((1, d_out), single_buffer),       # b2
                ],
                out_specs=pl.BlockSpec((bm, d_out), lambda i: (i, 0)),
            ),
            compiler_params=compiler_params,
            cost_estimate=cost,
        )(x, w1c, b1f, w2c, b2f)

    return _with_single_buffer_fallback(call)


def composite_forward_ref(x, w1, b1, w2, b2):
    # Pure-JAX reference of the sequential composite (module semantics).
    h = x @ w1 + jnp.reshape(b1, (1, -1))
    return h @ w2 + jnp.reshape(b2, (1, -1))


# --------------------------------------------------------------------------
# Tests
# --------------------------------------------------------------------------

if __name__ == "__main__":
    # Lane-aligned feature dims (multiples of 128).
    B, D, H = 512, 128, 128

    key = jax.random.PRNGKey(0)
    kx, k1, k2, k3, k4 = jax.random.split(key, 5)

    x = jax.random.normal(kx, (B, D), dtype=jnp.float32)
    w1 = jax.random.normal(k1, (D, H), dtype=jnp.float32) * 0.1
    b1 = jax.random.normal(k2, (1, H), dtype=jnp.float32) * 0.1
    w2 = jax.random.normal(k3, (H, D), dtype=jnp.float32) * 0.1
    b2 = jax.random.normal(k4, (1, D), dtype=jnp.float32) * 0.1

    y_ref = composite_forward_ref(x, w1, b1, w2, b2)
    scale = float(jnp.max(jnp.abs(y_ref)))

    # 1) General sequential-composite path (two in-kernel matmuls), f32.
    y_seq = jax.block_until_ready(composite_forward_sequential(x, w1, b1, w2, b2))
    assert jnp.allclose(y_seq, y_ref, atol=1e-4, rtol=1e-4), "sequential mismatch"

    # 2) Fused single-GEMM path, f32.  Weights fused ONCE, reused across calls
    #    (hoisted out of the per-call path per the perf review).
    w_f32, b_fused = fuse_affine_params(w1, b1, w2, b2)
    y_fused = jax.block_until_ready(composite_forward_fused(x, w_f32, b_fused))
    err = float(jnp.max(jnp.abs(y_fused - y_ref)))
    assert err < 1e-2 * scale, f"fused f32 error too large: {err}"
    jax.block_until_ready(composite_forward_fused(x, w_f32, b_fused))  # reuse

    # 3) Fused bf16 operand path (v6e/v7x MXU fast path), f32 accumulation;
    #    x stays f32 in HBM — the cast happens inside the kernel.
    w_bf16, _ = fuse_affine_params(w1, b1, w2, b2, compute_dtype=jnp.bfloat16)
    y_bf16 = jax.block_until_ready(composite_forward_fused(x, w_bf16, b_fused))
    err = float(jnp.max(jnp.abs(y_bf16 - y_ref)))
    assert err < 5e-2 * scale, f"fused bf16 error too large: {err}"

    # 4) bf16 output (halves the store stream for consumers that accept bf16).
    y_bf16o = jax.block_until_ready(
        composite_forward_fused(x, w_bf16, b_fused, out_dtype=jnp.bfloat16))
    err = float(jnp.max(jnp.abs(y_bf16o.astype(jnp.float32) - y_ref)))
    assert err < 5e-2 * scale, f"bf16-out error too large: {err}"

    # 5) Ragged batch, tiled: B=300 with bm=128 forces a masked partial last
    #    block — no wrapper-side pad / slice HBM round trips.
    y_rag = jax.block_until_ready(
        composite_forward_sequential(x[:300], w1, b1, w2, b2, bm=128))
    assert jnp.allclose(y_rag, y_ref[:300], atol=1e-4, rtol=1e-4), "ragged mismatch"

    # TODO(synk): forward_and_ladj / inverse / inverse_and_ladj of
    # CompositeTransform depend on the concrete sub-transform inverses and
    # log-det-Jacobians; only forward() is implemented here.
    print("KERNEL_OK")
</pallas_src>

<mosaic_0001>
module attributes {stable_mosaic.version = 11 : i64} {
  func.func @_sequential_affine_kernel(%arg0: i32, %arg1: memref<512x128xf32, #tpu.memory_space<vmem>>, %arg2: memref<128x128xf32, #tpu.memory_space<vmem>>, %arg3: memref<1x128xf32, #tpu.memory_space<vmem>>, %arg4: memref<128x128xf32, #tpu.memory_space<vmem>>, %arg5: memref<1x128xf32, #tpu.memory_space<vmem>>, %arg6: memref<512x128xf32, #tpu.memory_space<vmem>>) attributes {dimension_semantics = [#tpu.dimension_semantics<parallel>], iteration_bounds = array<i64: 1>, scalar_prefetch = 0 : i64, scratch_operands = 0 : i64, tpu.core_type = #tpu.core_type<tc>, window_params = [{transform_indices = @transform_0, window_bounds = array<i64: 512, 128>}, {pipeline_mode = #tpu.pipeline_mode<synchronous>, transform_indices = @transform_1, window_bounds = array<i64: 128, 128>}, {pipeline_mode = #tpu.pipeline_mode<synchronous>, transform_indices = @transform_2, window_bounds = array<i64: 1, 128>}, {pipeline_mode = #tpu.pipeline_mode<synchronous>, transform_indices = @transform_3, window_bounds = array<i64: 128, 128>}, {pipeline_mode = #tpu.pipeline_mode<synchronous>, transform_indices = @transform_4, window_bounds = array<i64: 1, 128>}, {transform_indices = @transform_5, window_bounds = array<i64: 512, 128>}]} {
    %c0 = arith.constant 0 : index
    %c0_0 = arith.constant 0 : index
    %0 = vector.load %arg1[%c0, %c0_0] : memref<512x128xf32, #tpu.memory_space<vmem>>, vector<512x128xf32>
    %c0_1 = arith.constant 0 : index
    %c0_2 = arith.constant 0 : index
    %1 = vector.load %arg2[%c0_1, %c0_2] : memref<128x128xf32, #tpu.memory_space<vmem>>, vector<128x128xf32>
    %cst = arith.constant dense<0.000000e+00> : vector<512x128xf32>
    %2 = tpu.matmul %0, %1, %cst {dimension_numbers = #tpu.dot_dimension_numbers<[1], [0], [0], [1], [0, 0, 1, 1], [], []>} : vector<512x128xf32>, vector<128x128xf32>, vector<512x128xf32> -> vector<512x128xf32>
    %c0_3 = arith.constant 0 : index
    %c0_4 = arith.constant 0 : index
    %3 = vector.load %arg3[%c0_3, %c0_4] : memref<1x128xf32, #tpu.memory_space<vmem>>, vector<1x128xf32>
    %4 = vector.broadcast %3 : vector<1x128xf32> to vector<512x128xf32>
    %5 = arith.addf %2, %4 : vector<512x128xf32>
    %c0_5 = arith.constant 0 : index
    %c0_6 = arith.constant 0 : index
    %6 = vector.load %arg4[%c0_5, %c0_6] : memref<128x128xf32, #tpu.memory_space<vmem>>, vector<128x128xf32>
    %cst_7 = arith.constant dense<0.000000e+00> : vector<512x128xf32>
    %7 = tpu.matmul %5, %6, %cst_7 {dimension_numbers = #tpu.dot_dimension_numbers<[1], [0], [0], [1], [0, 0, 1, 1], [], []>} : vector<512x128xf32>, vector<128x128xf32>, vector<512x128xf32> -> vector<512x128xf32>
    %c0_8 = arith.constant 0 : index
    %c0_9 = arith.constant 0 : index
    %8 = vector.load %arg5[%c0_8, %c0_9] : memref<1x128xf32, #tpu.memory_space<vmem>>, vector<1x128xf32>
    %9 = vector.broadcast %8 : vector<1x128xf32> to vector<512x128xf32>
    %10 = arith.addf %7, %9 : vector<512x128xf32>
    %c0_10 = arith.constant 0 : index
    %c0_11 = arith.constant 0 : index
    %11 = vector.load %arg6[%c0_10, %c0_11] : memref<512x128xf32, #tpu.memory_space<vmem>>, vector<512x128xf32>
    tpu.vector_store %arg6[%c0_10, %c0_11], %10 {strides = array<i32>} : memref<512x128xf32, #tpu.memory_space<vmem>>, vector<512x128xf32>,
    return
  }
  func.func @transform_0(%arg0: i32) -> (i32, i32) {
    %c0_i32 = arith.constant 0 : i32
    %c0_i32_0 = arith.constant 0 : i32
    return %arg0, %c0_i32 : i32, i32
  }
  func.func @transform_1(%arg0: i32) -> (i32, i32) {
    %c0_i32 = arith.constant 0 : i32
    %c0_i32_0 = arith.constant 0 : i32
    %c0_i32_1 = arith.constant 0 : i32
    return %c0_i32, %c0_i32_0 : i32, i32
  }
  func.func @transform_2(%arg0: i32) -> (i32, i32) {
    %c0_i32 = arith.constant 0 : i32
    %c0_i32_0 = arith.constant 0 : i32
    %c0_i32_1 = arith.constant 0 : i32
    return %c0_i32, %c0_i32_0 : i32, i32
  }
  func.func @transform_3(%arg0: i32) -> (i32, i32) {
    %c0_i32 = arith.constant 0 : i32
    %c0_i32_0 = arith.constant 0 : i32
    %c0_i32_1 = arith.constant 0 : i32
    return %c0_i32, %c0_i32_0 : i32, i32
  }
  func.func @transform_4(%arg0: i32) -> (i32, i32) {
    %c0_i32 = arith.constant 0 : i32
    %c0_i32_0 = arith.constant 0 : i32
    %c0_i32_1 = arith.constant 0 : i32
    return %c0_i32, %c0_i32_0 : i32, i32
  }
  func.func @transform_5(%arg0: i32) -> (i32, i32) {
    %c0_i32 = arith.constant 0 : i32
    %c0_i32_0 = arith.constant 0 : i32
    return %arg0, %c0_i32 : i32, i32
  }
}

module attributes {stable_mosaic.version = 11 : i64} {
  func.func @_sequential_affine_kernel(%arg0: i32, %arg1: memref<512x128xf32, #tpu.memory_space<vmem>>, %arg2: memref<128x128xf32, #tpu.memory_space<vmem>>, %arg3: memref<1x128xf32, #tpu.memory_space<vmem>>, %arg4: memref<128x128xf32, #tpu.memory_space<vmem>>, %arg5: memref<1x128xf32, #tpu.memory_space<vmem>>, %arg6: memref<512x128xf32, #tpu.memory_space<vmem>>) attributes {dimension_semantics = [#tpu.dimension_semantics<parallel>], iteration_bounds = array<i64: 1>, scalar_prefetch = 0 : i64, scratch_operands = 0 : i64, tpu.core_type = #tpu.core_type<tc>, window_params = [{transform_indices = @transform_0, window_bounds = array<i64: 512, 128>}, {pipeline_mode = #tpu.pipeline_mode<synchronous>, transform_indices = @transform_1, window_bounds = array<i64: 128, 128>}, {pipeline_mode = #tpu.pipeline_mode<synchronous>, transform_indices = @transform_2, window_bounds = array<i64: 1, 128>}, {pipeline_mode = #tpu.pipeline_mode<synchronous>, transform_indices = @transform_3, window_bounds = array<i64: 128, 128>}, {pipeline_mode = #tpu.pipeline_mode<synchronous>, transform_indices = @transform_4, window_bounds = array<i64: 1, 128>}, {transform_indices = @transform_5, window_bounds = array<i64: 512, 128>}]} {
    %c0 = arith.constant 0 : index
    %c0_0 = arith.constant 0 : index
    %0 = vector.load %arg1[%c0, %c0_0] : memref<512x128xf32, #tpu.memory_space<vmem>>, vector<512x128xf32>
    %c0_1 = arith.constant 0 : index
    %c0_2 = arith.constant 0 : index
    %1 = vector.load %arg2[%c0_1, %c0_2] : memref<128x128xf32, #tpu.memory_space<vmem>>, vector<128x128xf32>
    %cst = arith.constant dense<0.000000e+00> : vector<512x128xf32>
    %2 = tpu.matmul %0, %1, %cst {dimension_numbers = #tpu.dot_dimension_numbers<[1], [0], [0], [1], [0, 0, 1, 1], [], []>} : vector<512x128xf32>, vector<128x128xf32>, vector<512x128xf32> -> vector<512x128xf32>
    %c0_3 = arith.constant 0 : index
    %c0_4 = arith.constant 0 : index
    %3 = vector.load %arg3[%c0_3, %c0_4] : memref<1x128xf32, #tpu.memory_space<vmem>>, vector<1x128xf32>
    %4 = vector.broadcast %3 : vector<1x128xf32> to vector<512x128xf32>
    %5 = arith.addf %2, %4 : vector<512x128xf32>
    %c0_5 = arith.constant 0 : index
    %c0_6 = arith.constant 0 : index
    %6 = vector.load %arg4[%c0_5, %c0_6] : memref<128x128xf32, #tpu.memory_space<vmem>>, vector<128x128xf32>
    %cst_7 = arith.constant dense<0.000000e+00> : vector<512x128xf32>
    %7 = tpu.matmul %5, %6, %cst_7 {dimension_numbers = #tpu.dot_dimension_numbers<[1], [0], [0], [1], [0, 0, 1, 1], [], []>} : vector<512x128xf32>, vector<128x128xf32>, vector<512x128xf32> -> vector<512x128xf32>
    %c0_8 = arith.constant 0 : index
    %c0_9 = arith.constant 0 : index
    %8 = vector.load %arg5[%c0_8, %c0_9] : memref<1x128xf32, #tpu.memory_space<vmem>>, vector<1x128xf32>
    %9 = vector.broadcast %8 : vector<1x128xf32> to vector<512x128xf32>
    %10 = arith.addf %7, %9 : vector<512x128xf32>
    %c0_10 = arith.constant 0 : index
    %c0_11 = arith.constant 0 : index
    %11 = vector.load %arg6[%c0_10, %c0_11] : memref<512x128xf32, #tpu.memory_space<vmem>>, vector<512x128xf32>
    tpu.vector_store %arg6[%c0_10, %c0_11], %10 {strides = array<i32>} : memref<512x128xf32, #tpu.memory_space<vmem>>, vector<512x128xf32>,
    return
  }
  func.func @transform_0(%arg0: i32) -> (i32, i32) {
    %c0_i32 = arith.constant 0 : i32
    %c0_i32_0 = arith.constant 0 : i32
    return %arg0, %c0_i32 : i32, i32
  }
  func.func @transform_1(%arg0: i32) -> (i32, i32) {
    %c0_i32 = arith.constant 0 : i32
    %c0_i32_0 = arith.constant 0 : i32
    %c0_i32_1 = arith.constant 0 : i32
    return %c0_i32, %c0_i32_0 : i32, i32
  }
  func.func @transform_2(%arg0: i32) -> (i32, i32) {
    %c0_i32 = arith.constant 0 : i32
    %c0_i32_0 = arith.constant 0 : i32
    %c0_i32_1 = arith.constant 0 : i32
    return %c0_i32, %c0_i32_0 : i32, i32
  }
  func.func @transform_3(%arg0: i32) -> (i32, i32) {
    %c0_i32 = arith.constant 0 : i32
    %c0_i32_0 = arith.constant 0 : i32
    %c0_i32_1 = arith.constant 0 : i32
    return %c0_i32, %c0_i32_0 : i32, i32
  }
  func.func @transform_4(%arg0: i32) -> (i32, i32) {
    %c0_i32 = arith.constant 0 : i32
    %c0_i32_0 = arith.constant 0 : i32
    %c0_i32_1 = arith.constant 0 : i32
    return %c0_i32, %c0_i32_0 : i32, i32
  }
  func.func @transform_5(%arg0: i32) -> (i32, i32) {
    %c0_i32 = arith.constant 0 : i32
    %c0_i32_0 = arith.constant 0 : i32
    return %arg0, %c0_i32 : i32, i32
  }
}

</mosaic_0001>

<bundles_post_ra>
// kernel: tpu_custom_call.1
= control target key start
LH: loop header
LB: loop body
LE: loop exit
PB: predicated region body
PF: predicated region fallthrough
CT: control target
= control target key end

     0   :  { %10 = vsyncpa [#allocation3], 0  ;;  %s1847_s0 = inlined_call_operand.hbm [shape: f32[512,128], index: 0, kind: input, shape index: {}]   ;;  %s1848_s1 = inlined_call_operand.hbm [shape: f32[128,128], index: 1, kind: input, shape index: {}]   ;;  %s1849_s2 = inlined_call_operand.vmem [shape: f32[1,128], index: 2, kind: input, shape index: {}]   ;;  %s1850_s3 = inlined_call_operand.hbm [shape: f32[128,128], index: 3, kind: input, shape index: {}]   ;;  %s1851_s4 = inlined_call_operand.vmem [shape: f32[1,128], index: 4, kind: input, shape index: {}]   ;;  %s1852_s5 = inlined_call_operand.hbm [shape: f32[512,128], index: 5, kind: output, shape index: {}]  }
   0x1   :  { %11 = vsyncpa [#allocation6], 0 }
   0x2   :  { %12 = vsyncpa [#allocation4], 0  ;;  %s1606_s18 = smov [#allocation5]   ;;  %s1607_s20 = smov [#allocation2]  }
   0x3   :  { %s30_s19 = sshll.u32 %s1606_s18, 4  ;;  %s18_s21 = sshll.u32 %s1607_s20, 4  ;;  %s31_s19 = int_to_ptr.vmem [resolvable:$true] %s30_s19  ;;  %s1642_s21 = int_to_ptr.vmem [resolvable:$true] %s18_s21 }
   0x4   :  { %s1512_s24 = scalar_lea.hbm %s1848_s1, 2048 }
   0x5   :  { %p1513_p0 = scmp.ne.s32.totalorder %s1848_s1, %s1512_s24  ;;  %p1516_p1 = scmp.lt.u32.totalorder %s1512_s24, %s1848_s1 }
   0x7   :  { %p1518_p2 = pnand %p1516_p1, %p1513_p0 }
   0x9   :  { %1521 = shalt.err (!%p1518_p2)
}
   0xa   :  { %s1522_s29 = scalar_lea.vmem %s31_s19, 2048  ;;  %p1527_p4 = scmp.lt.s32.totalorder %s31_s19, %s31_s19 }
   0xb   :  { %p1523_p3 = scmp.ne.s32.totalorder %s31_s19, %s1522_s29  ;;  %p1528_p5 = scmp.lt.s32.totalorder %s1522_s29, %s1522_s29 }
   0xd   :  { %p1529_p6 = por %p1528_p5, %p1527_p4 }
   0xf   :  { %p1530_p7 = pnand %p1529_p6, %p1523_p3 }
  0x11   :  { %1533 = shalt.err (!%p1530_p7)
}
  0x12   :  { %s1608_s30 = smov 128   ;;  %s1609_s6 = smov 8  }
  0x13   :  { %36 = dma.hbm_to_vmem [thread:$0]  %s1848_s1, 2048, %s31_s19, [#allocation6], %s1608_s30, %s1608_s30, %s1609_s6  }
  0x14   :  { %s1534_s11 = scalar_lea.hbm %s1847_s0, 8192 }
  0x15   :  { %p1535_p8 = scmp.ne.s32.totalorder %s1847_s0, %s1534_s11  ;;  %p1538_p9 = scmp.lt.u32.totalorder %s1534_s11, %s1847_s0 }
  0x17   :  { %p1540_p10 = pnand %p1538_p9, %p1535_p8 }
  0x19   :  { %1543 = shalt.err (!%p1540_p10)
}
  0x1a   :  { %s1544_s16 = scalar_lea.vmem %s1642_s21, 8192  ;;  %p1549_p12 = scmp.lt.s32.totalorder %s1642_s21, %s1642_s21 }
  0x1b   :  { %p1545_p11 = scmp.ne.s32.totalorder %s1642_s21, %s1544_s16  ;;  %p1550_p13 = scmp.lt.s32.totalorder %s1544_s16, %s1544_s16 }
  0x1d   :  { %p1551_p0 = por %p1550_p13, %p1549_p12 }
  0x1f   :  { %p1552_p1 = pnand %p1551_p0, %p1545_p11 }
  0x21   :  { %1555 = shalt.err (!%p1552_p1)
}
  0x22   :  { %24 = dma.hbm_to_vmem [thread:$0]  %s1847_s0, 8192, %s1642_s21, [#allocation3], %s1608_s30, %s1608_s30, %s1609_s6  }
  0x23   :  { %s1610_s18 = smov [#allocation7]   ;;  %s1556_s23 = scalar_lea.hbm %s1850_s3, 2048 }
  0x24   :  { %s44_s19 = sshll.u32 %s1610_s18, 4  ;;  %p1557_p2 = scmp.ne.s32.totalorder %s1850_s3, %s1556_s23  ;;  %s45_s19 = int_to_ptr.vmem [resolvable:$true] %s44_s19 }
  0x25   :  { %p1560_p3 = scmp.lt.u32.totalorder %s1556_s23, %s1850_s3 }
  0x27   :  { %p1562_p4 = pnand %p1560_p3, %p1557_p2 }
  0x29   :  { %1565 = shalt.err (!%p1562_p4)
}
  0x2a   :  { %s1566_s28 = scalar_lea.vmem %s45_s19, 2048  ;;  %p1571_p6 = scmp.lt.s32.totalorder %s45_s19, %s45_s19 }
  0x2b   :  { %p1567_p5 = scmp.ne.s32.totalorder %s45_s19, %s1566_s28  ;;  %p1572_p7 = scmp.lt.s32.totalorder %s1566_s28, %s1566_s28 }
  0x2d   :  { %p1573_p8 = por %p1572_p7, %p1571_p6 }
  0x2f   :  { %p1574_p9 = pnand %p1573_p8, %p1567_p5 }
  0x31   :  { %1577 = shalt.err (!%p1574_p9)
}
  0x32   :  { %50 = dma.hbm_to_vmem [thread:$0]  %s1850_s3, 2048, %s45_s19, [#allocation6], %s1608_s30, %s1608_s30, %s1609_s6  }
  0x33   :  { %1600 = dma.done.wait [#allocation3], 8192  }
  0x34   :  { %1601 = vsyncadd [#allocation3], 4294959104 }
  0x35   :  { %1602 = dma.done.wait [#allocation6], 4096  }
  0x36   :  { %1603 = vsyncadd [#allocation6], 4294963200  ;;  %v126_v0 = vld [vmem:[#allocation5] sm:$0xff]  ;;  %v127_v1 = vld [vmem:[#allocation5 + $0x8] sm:$0xff] }
  0x37   :  { %v128_v2 = vld [vmem:[#allocation5 + $0x10] sm:$0xff]  ;;  %v1442_v3 = vpack.c.bf16 %v127_v1, %v126_v0  ;;  %v129_v4 = vld [vmem:[#allocation5 + $0x18] sm:$0xff]  ;;  %v130_v6 = vld [vmem:[#allocation5 + $0x20] sm:$0xff] }
  0x38   :  { %v1446_v5 = vpack.c.bf16 %v129_v4, %v128_v2  ;;  %v131_v7 = vld [vmem:[#allocation5 + $0x28] sm:$0xff]  ;;  %v62_v9 = vld [vmem:[#allocation2] sm:$0xff]  ;;  %v132_v10 = vld [vmem:[#allocation5 + $0x30] sm:$0xff] }
  0x39   :  { %1443 = vmatprep.subr.bf16.mxu0 %v1442_v3  ;;  %v1450_v8 = vpack.c.bf16 %v131_v7, %v130_v6  ;;  %v133_v11 = vld [vmem:[#allocation5 + $0x38] sm:$0xff]  ;;  %1218 = vmatprep.mubr.f32.mxu0 %v62_v9  ;;  %v134_v13 = vld [vmem:[#allocation5 + $0x40] sm:$0xff]  ;;  %v135_v14 = vld [vmem:[#allocation5 + $0x48] sm:$0xff] }
  0x3a   :  { %1445 = vmatpush3.bf16.msra.mxu0 %v1442_v3  ;;  %v1454_v12 = vpack.c.bf16 %v133_v11, %v132_v10  ;;  %v1458_v15 = vpack.c.bf16 %v135_v14, %v134_v13  ;;  %v136_v16 = vld [vmem:[#allocation5 + $0x50] sm:$0xff]  ;;  %v137_v17 = vld [vmem:[#allocation5 + $0x58] sm:$0xff]  ;;  %v138_v19 = vld [vmem:[#allocation5 + $0x60] sm:$0xff] }
  0x3b   :  { %1447 = vmatprep.subr.bf16.mxu0 %v1446_v5  ;;  %v1462_v18 = vpack.c.bf16 %v137_v17, %v136_v16  ;;  %v139_v20 = vld [vmem:[#allocation5 + $0x68] sm:$0xff]  ;;  %v140_v22 = vld [vmem:[#allocation5 + $0x70] sm:$0xff]  ;;  %v141_v23 = vld [vmem:[#allocation5 + $0x78] sm:$0xff] }
  0x3c   :  { %v1466_v21 = vpack.c.bf16 %v139_v20, %v138_v19  ;;  %v1470_v24 = vpack.c.bf16 %v141_v23, %v140_v22  ;;  %v534_v25 = vld [vmem:[#allocation7] sm:$0xff]  ;;  %v535_v26 = vld [vmem:[#allocation7 + $0x8] sm:$0xff]  ;;  %v536_v27 = vld [vmem:[#allocation7 + $0x10] sm:$0xff] }
  0x3d   :  { %v63_v28 = vld [vmem:[#allocation2 + $0x8] sm:$0xff]  ;;  %v1474_v29 = vpack.c.bf16 %v535_v26, %v534_v25  ;;  %v537_v30 = vld [vmem:[#allocation7 + $0x18] sm:$0xff]  ;;  %v64_v31 = vld [vmem:[#allocation2 + $0x10] sm:$0xff] }
  0x3e   :  { %1449 = vmatpush3.bf16.msra.mxu0 %v1446_v5  ;;  %v1478_v32 = vpack.c.bf16 %v537_v30, %v536_v27  ;;  %v538_v33 = vld [vmem:[#allocation7 + $0x20] sm:$0xff]  ;;  %v539_v34 = vld [vmem:[#allocation7 + $0x28] sm:$0xff]  ;;  %v65_v35 = vld [vmem:[#allocation2 + $0x18] sm:$0xff] }
  0x3f   :  { %1451 = vmatprep.subr.bf16.mxu0 %v1450_v8  ;;  %1475 = vmatprep.subr.bf16.mxu1 %v1474_v29  ;;  %v1482_v36 = vpack.c.bf16 %v539_v34, %v538_v33  ;;  %v66_v37 = vld [vmem:[#allocation2 + $0x20] sm:$0xff]  ;;  %v540_v38 = vld [vmem:[#allocation7 + $0x30] sm:$0xff]  ;;  %v541_v39 = vld [vmem:[#allocation7 + $0x38] sm:$0xff] }
  0x40   :  { %1477 = vmatpush3.bf16.msra.mxu1 %v1474_v29  ;;  %v67_v40 = vld [vmem:[#allocation2 + $0x28] sm:$0xff]  ;;  %v1486_v41 = vpack.c.bf16 %v541_v39, %v540_v38  ;;  %v68_v42 = vld [vmem:[#allocation2 + $0x30] sm:$0xff]  ;;  %v542_v43 = vld [vmem:[#allocation7 + $0x40] sm:$0xff] }
  0x41   :  { %1479 = vmatprep.subr.bf16.mxu1 %v1478_v32  ;;  %v543_v44 = vld [vmem:[#allocation7 + $0x48] sm:$0xff]  ;;  %v69_v45 = vld [vmem:[#allocation2 + $0x38] sm:$0xff]  ;;  %v70_v47 = vld [vmem:[#allocation2 + $0x40] sm:$0xff] }
  0x42   :  { %1453 = vmatpush3.bf16.msra.mxu0 %v1450_v8  ;;  %v1490_v46 = vpack.c.bf16 %v543_v44, %v542_v43  ;;  %v544_v48 = vld [vmem:[#allocation7 + $0x50] sm:$0xff]  ;;  %v545_v49 = vld [vmem:[#allocation7 + $0x58] sm:$0xff]  ;;  %v71_v50 = vld [vmem:[#allocation2 + $0x48] sm:$0xff] }
  0x43   :  { %1455 = vmatprep.subr.bf16.mxu0 %v1454_v12  ;;  %v1494_v51 = vpack.c.bf16 %v545_v49, %v544_v48  ;;  %v72_v52 = vld [vmem:[#allocation2 + $0x50] sm:$0xff]  ;;  %v546_v53 = vld [vmem:[#allocation7 + $0x60] sm:$0xff]  ;;  %v547_v54 = vld [vmem:[#allocation7 + $0x68] sm:$0xff] }
  0x44   :  { %1481 = vmatpush3.bf16.msra.mxu1 %v1478_v32  ;;  %v73_v55 = vld [vmem:[#allocation2 + $0x58] sm:$0xff]  ;;  %v1498_v56 = vpack.c.bf16 %v547_v54, %v546_v53  ;;  %v74_v57 = vld [vmem:[#allocation2 + $0x60] sm:$0xff]  ;;  %v75_v58 = vld [vmem:[#allocation2 + $0x68] sm:$0xff] }
  0x45   :  { %1483 = vmatprep.subr.bf16.mxu1 %v1482_v36  ;;  %v76_v59 = vld [vmem:[#allocation2 + $0x70] sm:$0xff]  ;;  %v77_v60 = vld [vmem:[#allocation2 + $0x78] sm:$0xff]  ;;  %v78_v61 = vld [vmem:[#allocation2 + $0x80] sm:$0xff] }
  0x46   :  { %1457 = vmatpush3.bf16.msra.mxu0 %v1454_v12  ;;  %v79_v62 = vld [vmem:[#allocation2 + $0x88] sm:$0xff]  ;;  %v80_v63 = vld [vmem:[#allocation2 + $0x90] sm:$0xff]  ;;  %v81_v0 = vld [vmem:[#allocation2 + $0x98] sm:$0xff] }
  0x47   :  { %1459 = vmatprep.subr.bf16.mxu0 %v1458_v15  ;;  %v82_v1 = vld [vmem:[#allocation2 + $0xa0] sm:$0xff]  ;;  %v83_v2 = vld [vmem:[#allocation2 + $0xa8] sm:$0xff]  ;;  %v84_v3 = vld [vmem:[#allocation2 + $0xb0] sm:$0xff] }
  0x48   :  { %1485 = vmatpush3.bf16.msra.mxu1 %v1482_v36  ;;  %v85_v4 = vld [vmem:[#allocation2 + $0xb8] sm:$0xff]  ;;  %v86_v5 = vld [vmem:[#allocation2 + $0xc0] sm:$0xff]  ;;  %v87_v6 = vld [vmem:[#allocation2 + $0xc8] sm:$0xff] }
  0x49   :  { %1487 = vmatprep.subr.bf16.mxu1 %v1486_v41  ;;  %v88_v7 = vld [vmem:[#allocation2 + $0xd0] sm:$0xff]  ;;  %v89_v8 = vld [vmem:[#allocation2 + $0xd8] sm:$0xff]  ;;  %v90_v9 = vld [vmem:[#allocation2 + $0xe0] sm:$0xff] }
  0x4a   :  { %1461 = vmatpush3.bf16.msra.mxu0 %v1458_v15  ;;  %v91_v10 = vld [vmem:[#allocation2 + $0xe8] sm:$0xff]  ;;  %v92_v11 = vld [vmem:[#allocation2 + $0xf0] sm:$0xff]  ;;  %v93_v12 = vld [vmem:[#allocation2 + $0xf8] sm:$0xff] }
  0x4b   :  { %1463 = vmatprep.subr.bf16.mxu0 %v1462_v18  ;;  %v94_v13 = vld [vmem:[#allocation2 + $0x100] sm:$0xff]  ;;  %v95_v14 = vld [vmem:[#allocation2 + $0x108] sm:$0xff]  ;;  %v96_v15 = vld [vmem:[#allocation2 + $0x110] sm:$0xff] }
  0x4c   :  { %1489 = vmatpush3.bf16.msra.mxu1 %v1486_v41  ;;  %v97_v16 = vld [vmem:[#allocation2 + $0x118] sm:$0xff]  ;;  %v98_v17 = vld [vmem:[#allocation2 + $0x120] sm:$0xff]  ;;  %v100_v19 = vld [vmem:[#allocation2 + $0x130] sm:$0xff] }
  0x4d   :  { %1491 = vmatprep.subr.bf16.mxu1 %v1490_v46  ;;  %v101_v20 = vld [vmem:[#allocation2 + $0x138] sm:$0xff]  ;;  %v103_v22 = vld [vmem:[#allocation2 + $0x148] sm:$0xff]  ;;  %v104_v23 = vld [vmem:[#allocation2 + $0x150] sm:$0xff] }
  0x4e   :  { %1465 = vmatpush3.bf16.msra.mxu0 %v1462_v18  ;;  %v99_v18 = vld [vmem:[#allocation2 + $0x128] sm:$0xff]  ;;  %v548_v25 = vld [vmem:[#allocation7 + $0x70] sm:$0xff]  ;;  %v549_v26 = vld [vmem:[#allocation7 + $0x78] sm:$0xff] }
  0x4f   :  { %1467 = vmatprep.subr.bf16.mxu0 %v1466_v21  ;;  %v106_v27 = vld [vmem:[#allocation2 + $0x160] sm:$0xff]  ;;  %v107_v29 = vld [vmem:[#allocation2 + $0x168] sm:$0xff]  ;;  %v108_v30 = vld [vmem:[#allocation2 + $0x170] sm:$0xff] }
  0x50   :  { %1493 = vmatpush3.bf16.msra.mxu1 %v1490_v46  ;;  %v110_v32 = vld [vmem:[#allocation2 + $0x180] sm:$0xff]  ;;  %v111_v33 = vld [vmem:[#allocation2 + $0x188] sm:$0xff]  ;;  %v112_v34 = vld [vmem:[#allocation2 + $0x190] sm:$0xff] }
  0x51   :  { %1495 = vmatprep.subr.bf16.mxu1 %v1494_v51  ;;  %v114_v36 = vld [vmem:[#allocation2 + $0x1a0] sm:$0xff]  ;;  %v116_v38 = vld [vmem:[#allocation2 + $0x1b0] sm:$0xff]  ;;  %v117_v39 = vld [vmem:[#allocation2 + $0x1b8] sm:$0xff] }
  0x52   :  { %1469 = vmatpush3.bf16.msra.mxu0 %v1466_v21  ;;  %v102_v21 = vld [vmem:[#allocation2 + $0x140] sm:$0xff]  ;;  %v119_v41 = vld [vmem:[#allocation2 + $0x1c8] sm:$0xff]  ;;  %v121_v43 = vld [vmem:[#allocation2 + $0x1d8] sm:$0xff] }
  0x53   :  { %1471 = vmatprep.subr.bf16.mxu0 %v1470_v24  ;;  %v122_v44 = vld [vmem:[#allocation2 + $0x1e0] sm:$0xff]  ;;  %v124_v46 = vld [vmem:[#allocation2 + $0x1f0] sm:$0xff] }
  0x54   :  { %1497 = vmatpush3.bf16.msra.mxu1 %v1494_v51  ;;  %v1697_v48 = vld [vmem:[%s1849_s2] ss:$0 sm:$0xff] }
  0x55   :  { %1499 = vmatprep.subr.bf16.mxu1 %v1498_v56 }
  0x56   :  { %1473 = vmatpush3.bf16.msra.mxu0 %v1470_v24  ;;  %v105_v24 = vld [vmem:[#allocation2 + $0x158] sm:$0xff] }
  0x58   :  { %1501 = vmatpush3.bf16.msra.mxu1 %v1498_v56 }
  0x59   :  { %1219 = vmatmul.mubr.f32.vlgmr.msra.gmra.mrb[0].mxu0 %v63_v28  ;;  %v1502_v28 = vpack.c.bf16 %v549_v26, %v548_v25 }
  0x5a   :  { %1221 = vmatprep.mubr.f32.mxu0 %v64_v31  ;;  %v109_v31 = vld [vmem:[#allocation2 + $0x178] sm:$0xff] }
  0x5b   :  { %1503 = vmatprep.subr.bf16.mxu1 %v1502_v28 }
  0x5c   :  { %1505 = vmatpush3.bf16.msra.mxu1 %v1502_v28 }
  0x5d   :  { %1222 = vmatmul.mubr.f32.gmra.mrb[2].mxu0 %v65_v35  ;;  %v113_v35 = vld [vmem:[#allocation2 + $0x198] sm:$0xff] }
  0x5e   :  { %1224 = vmatprep.mubr.f32.mxu0 %v66_v37  ;;  %v115_v37 = vld [vmem:[#allocation2 + $0x1a8] sm:$0xff] }
  0x61   :  { %1225 = vmatmul.mubr.f32.gmra.mrb[4].mxu0 %v67_v40  ;;  %v118_v40 = vld [vmem:[#allocation2 + $0x1c0] sm:$0xff] }
  0x62   :  { %1227 = vmatprep.mubr.f32.mxu0 %v68_v42  ;;  %v120_v42 = vld [vmem:[#allocation2 + $0x1d0] sm:$0xff] }
  0x65   :  { %1228 = vmatmul.mubr.f32.gmra.mrb[6].mxu0 %v69_v45  ;;  %v123_v45 = vld [vmem:[#allocation2 + $0x1e8] sm:$0xff] }
  0x66   :  { %1230 = vmatprep.mubr.f32.mxu0 %v70_v47  ;;  %v125_v47 = vld [vmem:[#allocation2 + $0x1f8] sm:$0xff] }
  0x69   :  { %1231 = vmatmul.mubr.f32.gmra.mrb[8].mxu0 %v71_v50 }
  0x6a   :  { %1233 = vmatprep.mubr.f32.mxu0 %v72_v52 }
  0x6d   :  { %1234 = vmatmul.mubr.f32.gmra.mrb[10].mxu0 %v73_v55 }
  0x6e   :  { %1236 = vmatprep.mubr.f32.mxu0 %v74_v57 }
  0x71   :  { %1237 = vmatmul.mubr.f32.gmra.mrb[12].mxu0 %v75_v58 }
  0x72   :  { %1239 = vmatprep.mubr.f32.mxu0 %v76_v59 }
  0x75   :  { %1240 = vmatmul.mubr.f32.gmra.mrb[14].mxu0 %v77_v60 }
  0x76   :  { %1242 = vmatprep.mubr.f32.mxu0 %v78_v61 }
  0x79   :  { %1243 = vmatmul.mubr.f32.gmra.mrb[16].mxu0 %v79_v62 }
  0x7a   :  { %1245 = vmatprep.mubr.f32.mxu0 %v80_v63 }
  0x7d   :  { %1246 = vmatmul.mubr.f32.gmra.mrb[18].mxu0 %v81_v0 }
  0x7e   :  { %1248 = vmatprep.mubr.f32.mxu0 %v82_v1 }
  0x81   :  { %1249 = vmatmul.mubr.f32.gmra.mrb[20].mxu0 %v83_v2 }
  0x82   :  { %1251 = vmatprep.mubr.f32.mxu0 %v84_v3 }
  0x85   :  { %1252 = vmatmul.mubr.f32.gmra.mrb[22].mxu0 %v85_v4 }
  0x86   :  { %1254 = vmatprep.mubr.f32.mxu0 %v86_v5 }
  0x89   :  { %1255 = vmatmul.mubr.f32.gmra.mrb[24].mxu0 %v87_v6 }
  0x8a   :  { %1257 = vmatprep.mubr.f32.mxu0 %v88_v7 }
  0x8d   :  { %1258 = vmatmul.mubr.f32.gmra.mrb[26].mxu0 %v89_v8 }
  0x8e   :  { %1260 = vmatprep.mubr.f32.mxu0 %v90_v9 }
  0x91   :  { %1261 = vmatmul.mubr.f32.gmra.mrb[28].mxu0 %v91_v10 }
  0x92   :  { %1263 = vmatprep.mubr.f32.mxu0 %v92_v11 }
  0x95   :  { %1264 = vmatmul.mubr.f32.gmra.mrb[30].mxu0 %v93_v12 }
  0x96   :  { %1266 = vmatprep.mubr.f32.mxu0 %v94_v13 }
  0x99   :  { %1267 = vmatmul.mubr.f32.gmra.mrb[32].mxu0 %v95_v14 }
  0x9a   :  { %1269 = vmatprep.mubr.f32.mxu0 %v96_v15 }
  0x9d   :  { %1270 = vmatmul.mubr.f32.gmra.mrb[34].mxu0 %v97_v16 }
  0x9e   :  { %1272 = vmatprep.mubr.f32.mxu0 %v98_v17 }
  0xa1   :  { %1273 = vmatmul.mubr.f32.gmra.mrb[36].mxu0 %v99_v18 }
  0xa2   :  { %1275 = vmatprep.mubr.f32.mxu0 %v100_v19 }
  0xa5   :  { %1276 = vmatmul.mubr.f32.gmra.mrb[38].mxu0 %v101_v20 }
  0xa6   :  { %1278 = vmatprep.mubr.f32.mxu0 %v102_v21 }
  0xa9   :  { %1279 = vmatmul.mubr.f32.gmra.mrb[40].mxu0 %v103_v22 }
  0xaa   :  { %1281 = vmatprep.mubr.f32.mxu0 %v104_v23 }
  0xad   :  { %1282 = vmatmul.mubr.f32.gmra.mrb[42].mxu0 %v105_v24 }
  0xae   :  { %1284 = vmatprep.mubr.f32.mxu0 %v106_v27 }
  0xb1   :  { %1285 = vmatmul.mubr.f32.gmra.mrb[44].mxu0 %v107_v29 }
  0xb2   :  { %1287 = vmatprep.mubr.f32.mxu0 %v108_v30 }
  0xb5   :  { %1288 = vmatmul.mubr.f32.gmra.mrb[46].mxu0 %v109_v31 }
  0xb6   :  { %1290 = vmatprep.mubr.f32.mxu0 %v110_v32 }
  0xb9   :  { %1291 = vmatmul.mubr.f32.gmra.mrb[48].mxu0 %v111_v33 }
  0xba   :  { %1293 = vmatprep.mubr.f32.mxu0 %v112_v34 }
  0xbd   :  { %1294 = vmatmul.mubr.f32.gmra.mrb[50].mxu0 %v113_v35 }
  0xbe   :  { %1296 = vmatprep.mubr.f32.mxu0 %v114_v36 }
  0xc1   :  { %1297 = vmatmul.mubr.f32.gmra.mrb[52].mxu0 %v115_v37 }
  0xc2   :  { %1299 = vmatprep.mubr.f32.mxu0 %v116_v38 }
  0xc5   :  { %1300 = vmatmul.mubr.f32.gmra.mrb[54].mxu0 %v117_v39 }
  0xc6   :  { %1302 = vmatprep.mubr.f32.mxu0 %v118_v40 }
  0xc9   :  { %1303 = vmatmul.mubr.f32.gmra.mrb[56].mxu0 %v119_v41 }
  0xca   :  { %1305 = vmatprep.mubr.f32.mxu0 %v120_v42 }
  0xcd   :  { %1306 = vmatmul.mubr.f32.gmra.mrb[58].mxu0 %v121_v43 }
  0xce   :  { %1308 = vmatprep.mubr.f32.mxu0 %v122_v44 }
  0xd1   :  { %1309 = vmatmul.mubr.f32.gmra.mrb[60].mxu0 %v123_v45 }
  0xd2   :  { %1311 = vmatprep.mubr.f32.mxu0 %v124_v46 }
  0xd5   :  { %1312 = vmatmul.mubr.f32.gmra.mrb[62].mxu0 %v125_v47 }
 0x12c   :  { %v1220_v49 = vpop.f32.mrb[0].mxu0 }
 0x12d   :  { %v215_v50 = vpop.f32.mrb[1].mxu0  ;;  %v221_v52 = vadd.f32 %v1220_v49, %v1697_v48 }
 0x12e   :  { %v216_v51 = vadd.f32 %v1697_v48, %v215_v50 }
 0x130   :  { %v1223_v53 = vpop.f32.mrb[2].mxu0  ;;  %1346 = vmatprep.mubr.f32.mxu1 %v216_v51 }
 0x131   :  { %v225_v54 = vpop.f32.mrb[3].mxu0  ;;  %1347 = vmatmul.mubr.f32.vlgmr.msra.gmra.mrb[0].mxu1 %v221_v52  ;;  %v231_v56 = vadd.f32 %v1223_v53, %v1697_v48 }
 0x132   :  { %v226_v55 = vadd.f32 %v1697_v48, %v225_v54 }
 0x134   :  { %v1226_v57 = vpop.f32.mrb[4].mxu0  ;;  %1349 = vmatprep.mubr.f32.mxu1 %v226_v55 }
 0x135   :  { %v235_v58 = vpop.f32.mrb[5].mxu0  ;;  %1350 = vmatmul.mubr.f32.gmra.mrb[2].mxu1 %v231_v56  ;;  %v241_v60 = vadd.f32 %v1226_v57, %v1697_v48 }
 0x136   :  { %v236_v59 = vadd.f32 %v1697_v48, %v235_v58 }
 0x138   :  { %v1229_v61 = vpop.f32.mrb[6].mxu0  ;;  %1352 = vmatprep.mubr.f32.mxu1 %v236_v59 }
 0x139   :  { %v245_v62 = vpop.f32.mrb[7].mxu0  ;;  %1353 = vmatmul.mubr.f32.gmra.mrb[4].mxu1 %v241_v60  ;;  %v251_v0 = vadd.f32 %v1229_v61, %v1697_v48 }
 0x13a   :  { %v246_v63 = vadd.f32 %v1697_v48, %v245_v62 }
 0x13c   :  { %v1232_v1 = vpop.f32.mrb[8].mxu0  ;;  %1355 = vmatprep.mubr.f32.mxu1 %v246_v63 }
 0x13d   :  { %v255_v2 = vpop.f32.mrb[9].mxu0  ;;  %1356 = vmatmul.mubr.f32.gmra.mrb[6].mxu1 %v251_v0  ;;  %v261_v4 = vadd.f32 %v1232_v1, %v1697_v48 }
 0x13e   :  { %v256_v3 = vadd.f32 %v1697_v48, %v255_v2 }
 0x140   :  { %v1235_v5 = vpop.f32.mrb[10].mxu0  ;;  %1358 = vmatprep.mubr.f32.mxu1 %v256_v3 }
 0x141   :  { %v265_v6 = vpop.f32.mrb[11].mxu0  ;;  %1359 = vmatmul.mubr.f32.gmra.mrb[8].mxu1 %v261_v4  ;;  %v271_v8 = vadd.f32 %v1235_v5, %v1697_v48 }
 0x142   :  { %v266_v7 = vadd.f32 %v1697_v48, %v265_v6 }
 0x144   :  { %v1238_v9 = vpop.f32.mrb[12].mxu0  ;;  %1361 = vmatprep.mubr.f32.mxu1 %v266_v7 }
 0x145   :  { %v275_v10 = vpop.f32.mrb[13].mxu0  ;;  %1362 = vmatmul.mubr.f32.gmra.mrb[10].mxu1 %v271_v8  ;;  %v281_v12 = vadd.f32 %v1238_v9, %v1697_v48 }
 0x146   :  { %v276_v11 = vadd.f32 %v1697_v48, %v275_v10 }
 0x148   :  { %v1241_v13 = vpop.f32.mrb[14].mxu0  ;;  %1364 = vmatprep.mubr.f32.mxu1 %v276_v11 }
 0x149   :  { %v285_v14 = vpop.f32.mrb[15].mxu0  ;;  %1365 = vmatmul.mubr.f32.gmra.mrb[12].mxu1 %v281_v12  ;;  %v291_v16 = vadd.f32 %v1241_v13, %v1697_v48 }
 0x14a   :  { %v286_v15 = vadd.f32 %v1697_v48, %v285_v14 }
 0x14c   :  { %v1244_v17 = vpop.f32.mrb[16].mxu0  ;;  %1367 = vmatprep.mubr.f32.mxu1 %v286_v15 }
 0x14d   :  { %v295_v18 = vpop.f32.mrb[17].mxu0  ;;  %1368 = vmatmul.mubr.f32.gmra.mrb[14].mxu1 %v291_v16  ;;  %v301_v20 = vadd.f32 %v1244_v17, %v1697_v48 }
 0x14e   :  { %v296_v19 = vadd.f32 %v1697_v48, %v295_v18 }
 0x150   :  { %v1247_v21 = vpop.f32.mrb[18].mxu0  ;;  %1370 = vmatprep.mubr.f32.mxu1 %v296_v19 }
 0x151   :  { %v305_v22 = vpop.f32.mrb[19].mxu0  ;;  %1371 = vmatmul.mubr.f32.gmra.mrb[16].mxu1 %v301_v20  ;;  %v311_v24 = vadd.f32 %v1247_v21, %v1697_v48 }
 0x152   :  { %v306_v23 = vadd.f32 %v1697_v48, %v305_v22 }
 0x154   :  { %v1250_v25 = vpop.f32.mrb[20].mxu0  ;;  %1373 = vmatprep.mubr.f32.mxu1 %v306_v23 }
 0x155   :  { %v315_v26 = vpop.f32.mrb[21].mxu0  ;;  %1374 = vmatmul.mubr.f32.gmra.mrb[18].mxu1 %v311_v24  ;;  %v321_v28 = vadd.f32 %v1250_v25, %v1697_v48 }
 0x156   :  { %v316_v27 = vadd.f32 %v1697_v48, %v315_v26 }
 0x158   :  { %v1253_v29 = vpop.f32.mrb[22].mxu0  ;;  %1376 = vmatprep.mubr.f32.mxu1 %v316_v27 }
 0x159   :  { %v325_v30 = vpop.f32.mrb[23].mxu0  ;;  %1377 = vmatmul.mubr.f32.gmra.mrb[20].mxu1 %v321_v28  ;;  %v331_v32 = vadd.f32 %v1253_v29, %v1697_v48 }
 0x15a   :  { %v326_v31 = vadd.f32 %v1697_v48, %v325_v30 }
 0x15c   :  { %v1256_v33 = vpop.f32.mrb[24].mxu0  ;;  %1379 = vmatprep.mubr.f32.mxu1 %v326_v31 }
 0x15d   :  { %v335_v34 = vpop.f32.mrb[25].mxu0  ;;  %1380 = vmatmul.mubr.f32.gmra.mrb[22].mxu1 %v331_v32  ;;  %v341_v36 = vadd.f32 %v1256_v33, %v1697_v48 }
 0x15e   :  { %v336_v35 = vadd.f32 %v1697_v48, %v335_v34 }
 0x160   :  { %v1259_v37 = vpop.f32.mrb[26].mxu0  ;;  %1382 = vmatprep.mubr.f32.mxu1 %v336_v35 }
 0x161   :  { %v345_v38 = vpop.f32.mrb[27].mxu0  ;;  %1383 = vmatmul.mubr.f32.gmra.mrb[24].mxu1 %v341_v36  ;;  %v351_v40 = vadd.f32 %v1259_v37, %v1697_v48 }
 0x162   :  { %v346_v39 = vadd.f32 %v1697_v48, %v345_v38 }
 0x164   :  { %v1262_v41 = vpop.f32.mrb[28].mxu0  ;;  %1385 = vmatprep.mubr.f32.mxu1 %v346_v39 }
 0x165   :  { %v355_v42 = vpop.f32.mrb[29].mxu0  ;;  %1386 = vmatmul.mubr.f32.gmra.mrb[26].mxu1 %v351_v40  ;;  %v361_v44 = vadd.f32 %v1262_v41, %v1697_v48 }
 0x166   :  { %v356_v43 = vadd.f32 %v1697_v48, %v355_v42 }
 0x168   :  { %v1265_v45 = vpop.f32.mrb[30].mxu0  ;;  %1388 = vmatprep.mubr.f32.mxu1 %v356_v43 }
 0x169   :  { %v365_v46 = vpop.f32.mrb[31].mxu0  ;;  %1389 = vmatmul.mubr.f32.gmra.mrb[28].mxu1 %v361_v44  ;;  %v371_v49 = vadd.f32 %v1265_v45, %v1697_v48 }
 0x16a   :  { %v366_v47 = vadd.f32 %v1697_v48, %v365_v46 }
 0x16c   :  { %v1268_v50 = vpop.f32.mrb[32].mxu0  ;;  %1391 = vmatprep.mubr.f32.mxu1 %v366_v47 }
 0x16d   :  { %v375_v51 = vpop.f32.mrb[33].mxu0  ;;  %1392 = vmatmul.mubr.f32.gmra.mrb[30].mxu1 %v371_v49  ;;  %v381_v53 = vadd.f32 %v1268_v50, %v1697_v48 }
 0x16e   :  { %v376_v52 = vadd.f32 %v1697_v48, %v375_v51  ;;  %v1766_v51 = vld [vmem:[%s1851_s4] ss:$0 sm:$0xff]  ;;  %s1611_s4 = smov [#allocation8]  }
 0x16f   :  { %s1011_s8 = sshll.u32 %s1611_s4, 4  ;;  %s1012_s8 = int_to_ptr.vmem [resolvable:$true] %s1011_s8 }
 0x170   :  { %v1271_v54 = vpop.f32.mrb[34].mxu0  ;;  %1394 = vmatprep.mubr.f32.mxu1 %v376_v52  ;;  %s1578_s9 = scalar_lea.vmem %s1012_s8, 8192  ;;  %p1583_p11 = scmp.lt.s32.totalorder %s1012_s8, %s1012_s8 }
 0x171   :  { %v385_v55 = vpop.f32.mrb[35].mxu0  ;;  %1395 = vmatmul.mubr.f32.gmra.mrb[32].mxu1 %v381_v53  ;;  %v391_v57 = vadd.f32 %v1271_v54, %v1697_v48  ;;  %p1579_p10 = scmp.ne.s32.totalorder %s1012_s8, %s1578_s9  ;;  %p1584_p12 = scmp.lt.s32.totalorder %s1578_s9, %s1578_s9 }
 0x172   :  { %v386_v56 = vadd.f32 %v1697_v48, %v385_v55 }
 0x173   :  { %p1585_p13 = por %p1584_p12, %p1583_p11 }
 0x174   :  { %v1274_v58 = vpop.f32.mrb[36].mxu0  ;;  %1397 = vmatprep.mubr.f32.mxu1 %v386_v56 }
 0x175   :  { %v395_v59 = vpop.f32.mrb[37].mxu0  ;;  %1398 = vmatmul.mubr.f32.gmra.mrb[34].mxu1 %v391_v57  ;;  %v401_v61 = vadd.f32 %v1274_v58, %v1697_v48  ;;  %p1586_p0 = pnand %p1585_p13, %p1579_p10 }
 0x176   :  { %v396_v60 = vadd.f32 %v1697_v48, %v395_v59 }
 0x178   :  { %v1277_v62 = vpop.f32.mrb[38].mxu0  ;;  %1400 = vmatprep.mubr.f32.mxu1 %v396_v60 }
 0x179   :  { %v405_v63 = vpop.f32.mrb[39].mxu0  ;;  %1401 = vmatmul.mubr.f32.gmra.mrb[36].mxu1 %v401_v61  ;;  %v411_v1 = vadd.f32 %v1277_v62, %v1697_v48 }
 0x17a   :  { %v406_v0 = vadd.f32 %v1697_v48, %v405_v63 }
 0x17c   :  { %v1280_v2 = vpop.f32.mrb[40].mxu0  ;;  %1403 = vmatprep.mubr.f32.mxu1 %v406_v0 }
 0x17d   :  { %v415_v3 = vpop.f32.mrb[41].mxu0  ;;  %1404 = vmatmul.mubr.f32.gmra.mrb[38].mxu1 %v411_v1  ;;  %v421_v5 = vadd.f32 %v1280_v2, %v1697_v48 }
 0x17e   :  { %v416_v4 = vadd.f32 %v1697_v48, %v415_v3 }
 0x180   :  { %v1283_v6 = vpop.f32.mrb[42].mxu0  ;;  %1406 = vmatprep.mubr.f32.mxu1 %v416_v4 }
 0x181   :  { %v425_v7 = vpop.f32.mrb[43].mxu0  ;;  %1407 = vmatmul.mubr.f32.gmra.mrb[40].mxu1 %v421_v5  ;;  %v431_v9 = vadd.f32 %v1283_v6, %v1697_v48 }
 0x182   :  { %v426_v8 = vadd.f32 %v1697_v48, %v425_v7 }
 0x184   :  { %v1286_v10 = vpop.f32.mrb[44].mxu0  ;;  %1409 = vmatprep.mubr.f32.mxu1 %v426_v8 }
 0x185   :  { %v435_v11 = vpop.f32.mrb[45].mxu0  ;;  %1410 = vmatmul.mubr.f32.gmra.mrb[42].mxu1 %v431_v9  ;;  %v441_v13 = vadd.f32 %v1286_v10, %v1697_v48 }
 0x186   :  { %v436_v12 = vadd.f32 %v1697_v48, %v435_v11 }
 0x188   :  { %v1289_v14 = vpop.f32.mrb[46].mxu0  ;;  %1412 = vmatprep.mubr.f32.mxu1 %v436_v12 }
 0x189   :  { %v445_v15 = vpop.f32.mrb[47].mxu0  ;;  %1413 = vmatmul.mubr.f32.gmra.mrb[44].mxu1 %v441_v13  ;;  %v451_v17 = vadd.f32 %v1289_v14, %v1697_v48 }
 0x18a   :  { %v446_v16 = vadd.f32 %v1697_v48, %v445_v15 }
 0x18c   :  { %v1292_v18 = vpop.f32.mrb[48].mxu0  ;;  %1415 = vmatprep.mubr.f32.mxu1 %v446_v16 }
 0x18d   :  { %v455_v19 = vpop.f32.mrb[49].mxu0  ;;  %1416 = vmatmul.mubr.f32.gmra.mrb[46].mxu1 %v451_v17  ;;  %v461_v21 = vadd.f32 %v1292_v18, %v1697_v48 }
 0x18e   :  { %v456_v20 = vadd.f32 %v1697_v48, %v455_v19 }
 0x190   :  { %v1295_v22 = vpop.f32.mrb[50].mxu0  ;;  %1418 = vmatprep.mubr.f32.mxu1 %v456_v20 }
 0x191   :  { %v465_v23 = vpop.f32.mrb[51].mxu0  ;;  %1419 = vmatmul.mubr.f32.gmra.mrb[48].mxu1 %v461_v21  ;;  %v471_v25 = vadd.f32 %v1295_v22, %v1697_v48 }
 0x192   :  { %v466_v24 = vadd.f32 %v1697_v48, %v465_v23 }
 0x194   :  { %v1298_v26 = vpop.f32.mrb[52].mxu0  ;;  %1421 = vmatprep.mubr.f32.mxu1 %v466_v24 }
 0x195   :  { %v475_v27 = vpop.f32.mrb[53].mxu0  ;;  %1422 = vmatmul.mubr.f32.gmra.mrb[50].mxu1 %v471_v25  ;;  %v481_v29 = vadd.f32 %v1298_v26, %v1697_v48 }
 0x196   :  { %v476_v28 = vadd.f32 %v1697_v48, %v475_v27 }
 0x198   :  { %v1301_v30 = vpop.f32.mrb[54].mxu0  ;;  %1424 = vmatprep.mubr.f32.mxu1 %v476_v28 }
 0x199   :  { %v485_v31 = vpop.f32.mrb[55].mxu0  ;;  %1425 = vmatmul.mubr.f32.gmra.mrb[52].mxu1 %v481_v29  ;;  %v491_v33 = vadd.f32 %v1301_v30, %v1697_v48 }
 0x19a   :  { %v486_v32 = vadd.f32 %v1697_v48, %v485_v31 }
 0x19c   :  { %v1304_v34 = vpop.f32.mrb[56].mxu0  ;;  %1427 = vmatprep.mubr.f32.mxu1 %v486_v32 }
 0x19d   :  { %v495_v35 = vpop.f32.mrb[57].mxu0  ;;  %1428 = vmatmul.mubr.f32.gmra.mrb[54].mxu1 %v491_v33  ;;  %v501_v37 = vadd.f32 %v1304_v34, %v1697_v48 }
 0x19e   :  { %v496_v36 = vadd.f32 %v1697_v48, %v495_v35 }
 0x1a0   :  { %v1307_v38 = vpop.f32.mrb[58].mxu0  ;;  %1430 = vmatprep.mubr.f32.mxu1 %v496_v36 }
 0x1a1   :  { %v505_v39 = vpop.f32.mrb[59].mxu0  ;;  %1431 = vmatmul.mubr.f32.gmra.mrb[56].mxu1 %v501_v37  ;;  %v511_v41 = vadd.f32 %v1307_v38, %v1697_v48 }
 0x1a2   :  { %v506_v40 = vadd.f32 %v1697_v48, %v505_v39 }
 0x1a4   :  { %v1310_v42 = vpop.f32.mrb[60].mxu0  ;;  %1433 = vmatprep.mubr.f32.mxu1 %v506_v40 }
 0x1a5   :  { %v515_v43 = vpop.f32.mrb[61].mxu0  ;;  %1434 = vmatmul.mubr.f32.gmra.mrb[58].mxu1 %v511_v41  ;;  %v521_v45 = vadd.f32 %v1310_v42, %v1697_v48 }
 0x1a6   :  { %v516_v44 = vadd.f32 %v1697_v48, %v515_v43 }
 0x1a8   :  { %v1313_v46 = vpop.f32.mrb[62].mxu0  ;;  %1436 = vmatprep.mubr.f32.mxu1 %v516_v44 }
 0x1a9   :  { %v525_v47 = vpop.f32.mrb[63].mxu0  ;;  %1437 = vmatmul.mubr.f32.gmra.mrb[60].mxu1 %v521_v45  ;;  %v531_v50 = vadd.f32 %v1313_v46, %v1697_v48 }
 0x1aa   :  { %v526_v49 = vadd.f32 %v1697_v48, %v525_v47 }
 0x1ac   :  { %1439 = vmatprep.mubr.f32.mxu1 %v526_v49 }
 0x1ad   :  { %1440 = vmatmul.mubr.f32.gmra.mrb[62].mxu1 %v531_v50 }
 0x204   :  { %v1348_v52 = vpop.f32.mrb[0].mxu1 }
 0x205   :  { %v629_v53 = vadd.f32 %v1348_v52, %v1766_v51  ;;  %v623_v54 = vpop.f32.mrb[1].mxu1 }
 0x206   :  { %v624_v55 = vadd.f32 %v1766_v51, %v623_v54 }
 0x207   :  { %943 = vst [vmem:[#allocation8 + $0x8] sm:$0xff] %v629_v53 }
 0x208   :  { %942 = vst [vmem:[#allocation8] sm:$0xff] %v624_v55  ;;  %v1351_v56 = vpop.f32.mrb[2].mxu1 }
 0x209   :  { %v639_v57 = vadd.f32 %v1351_v56, %v1766_v51  ;;  %v633_v58 = vpop.f32.mrb[3].mxu1 }
 0x20a   :  { %v634_v48 = vadd.f32 %v1766_v51, %v633_v58 }
 0x20b   :  { %945 = vst [vmem:[#allocation8 + $0x18] sm:$0xff] %v639_v57 }
 0x20c   :  { %944 = vst [vmem:[#allocation8 + $0x10] sm:$0xff] %v634_v48  ;;  %v1354_v59 = vpop.f32.mrb[4].mxu1 }
 0x20d   :  { %v649_v60 = vadd.f32 %v1354_v59, %v1766_v51  ;;  %v643_v61 = vpop.f32.mrb[5].mxu1 }
 0x20e   :  { %v644_v62 = vadd.f32 %v1766_v51, %v643_v61 }
 0x20f   :  { %947 = vst [vmem:[#allocation8 + $0x28] sm:$0xff] %v649_v60 }
 0x210   :  { %946 = vst [vmem:[#allocation8 + $0x20] sm:$0xff] %v644_v62  ;;  %v1357_v63 = vpop.f32.mrb[6].mxu1 }
 0x211   :  { %v659_v0 = vadd.f32 %v1357_v63, %v1766_v51  ;;  %v653_v1 = vpop.f32.mrb[7].mxu1 }
 0x212   :  { %v654_v2 = vadd.f32 %v1766_v51, %v653_v1 }
 0x213   :  { %949 = vst [vmem:[#allocation8 + $0x38] sm:$0xff] %v659_v0 }
 0x214   :  { %948 = vst [vmem:[#allocation8 + $0x30] sm:$0xff] %v654_v2  ;;  %v1360_v3 = vpop.f32.mrb[8].mxu1 }
 0x215   :  { %v669_v4 = vadd.f32 %v1360_v3, %v1766_v51  ;;  %v663_v5 = vpop.f32.mrb[9].mxu1 }
 0x216   :  { %v664_v6 = vadd.f32 %v1766_v51, %v663_v5 }
 0x217   :  { %951 = vst [vmem:[#allocation8 + $0x48] sm:$0xff] %v669_v4 }
 0x218   :  { %950 = vst [vmem:[#allocation8 + $0x40] sm:$0xff] %v664_v6  ;;  %v1363_v7 = vpop.f32.mrb[10].mxu1 }
 0x219   :  { %v679_v8 = vadd.f32 %v1363_v7, %v1766_v51  ;;  %v673_v9 = vpop.f32.mrb[11].mxu1 }
 0x21a   :  { %v674_v10 = vadd.f32 %v1766_v51, %v673_v9 }
 0x21b   :  { %953 = vst [vmem:[#allocation8 + $0x58] sm:$0xff] %v679_v8 }
 0x21c   :  { %952 = vst [vmem:[#allocation8 + $0x50] sm:$0xff] %v674_v10  ;;  %v1366_v11 = vpop.f32.mrb[12].mxu1 }
 0x21d   :  { %v689_v12 = vadd.f32 %v1366_v11, %v1766_v51  ;;  %v683_v13 = vpop.f32.mrb[13].mxu1 }
 0x21e   :  { %v684_v14 = vadd.f32 %v1766_v51, %v683_v13 }
 0x21f   :  { %955 = vst [vmem:[#allocation8 + $0x68] sm:$0xff] %v689_v12 }
 0x220   :  { %954 = vst [vmem:[#allocation8 + $0x60] sm:$0xff] %v684_v14  ;;  %v1369_v15 = vpop.f32.mrb[14].mxu1 }
 0x221   :  { %v699_v16 = vadd.f32 %v1369_v15, %v1766_v51  ;;  %v693_v17 = vpop.f32.mrb[15].mxu1 }
 0x222   :  { %v694_v18 = vadd.f32 %v1766_v51, %v693_v17 }
 0x223   :  { %957 = vst [vmem:[#allocation8 + $0x78] sm:$0xff] %v699_v16 }
 0x224   :  { %956 = vst [vmem:[#allocation8 + $0x70] sm:$0xff] %v694_v18  ;;  %v1372_v19 = vpop.f32.mrb[16].mxu1 }
 0x225   :  { %v709_v20 = vadd.f32 %v1372_v19, %v1766_v51  ;;  %v703_v21 = vpop.f32.mrb[17].mxu1 }
 0x226   :  { %v704_v22 = vadd.f32 %v1766_v51, %v703_v21 }
 0x227   :  { %959 = vst [vmem:[#allocation8 + $0x88] sm:$0xff] %v709_v20 }
 0x228   :  { %958 = vst [vmem:[#allocation8 + $0x80] sm:$0xff] %v704_v22  ;;  %v1375_v23 = vpop.f32.mrb[18].mxu1 }
 0x229   :  { %v719_v24 = vadd.f32 %v1375_v23, %v1766_v51  ;;  %v713_v25 = vpop.f32.mrb[19].mxu1 }
 0x22a   :  { %v714_v26 = vadd.f32 %v1766_v51, %v713_v25 }
 0x22b   :  { %961 = vst [vmem:[#allocation8 + $0x98] sm:$0xff] %v719_v24 }
 0x22c   :  { %960 = vst [vmem:[#allocation8 + $0x90] sm:$0xff] %v714_v26  ;;  %v1378_v27 = vpop.f32.mrb[20].mxu1 }
 0x22d   :  { %v729_v28 = vadd.f32 %v1378_v27, %v1766_v51  ;;  %v723_v29 = vpop.f32.mrb[21].mxu1 }
 0x22e   :  { %v724_v30 = vadd.f32 %v1766_v51, %v723_v29 }
 0x22f   :  { %963 = vst [vmem:[#allocation8 + $0xa8] sm:$0xff] %v729_v28 }
 0x230   :  { %962 = vst [vmem:[#allocation8 + $0xa0] sm:$0xff] %v724_v30  ;;  %v1381_v31 = vpop.f32.mrb[22].mxu1 }
 0x231   :  { %v739_v32 = vadd.f32 %v1381_v31, %v1766_v51  ;;  %v733_v33 = vpop.f32.mrb[23].mxu1 }
 0x232   :  { %v734_v34 = vadd.f32 %v1766_v51, %v733_v33 }
 0x233   :  { %965 = vst [vmem:[#allocation8 + $0xb8] sm:$0xff] %v739_v32 }
 0x234   :  { %964 = vst [vmem:[#allocation8 + $0xb0] sm:$0xff] %v734_v34  ;;  %v1384_v35 = vpop.f32.mrb[24].mxu1 }
 0x235   :  { %v749_v36 = vadd.f32 %v1384_v35, %v1766_v51  ;;  %v743_v37 = vpop.f32.mrb[25].mxu1 }
 0x236   :  { %v744_v38 = vadd.f32 %v1766_v51, %v743_v37 }
 0x237   :  { %967 = vst [vmem:[#allocation8 + $0xc8] sm:$0xff] %v749_v36 }
 0x238   :  { %966 = vst [vmem:[#allocation8 + $0xc0] sm:$0xff] %v744_v38  ;;  %v1387_v39 = vpop.f32.mrb[26].mxu1 }
 0x239   :  { %v759_v40 = vadd.f32 %v1387_v39, %v1766_v51  ;;  %v753_v41 = vpop.f32.mrb[27].mxu1 }
 0x23a   :  { %v754_v42 = vadd.f32 %v1766_v51, %v753_v41 }
 0x23b   :  { %969 = vst [vmem:[#allocation8 + $0xd8] sm:$0xff] %v759_v40 }
 0x23c   :  { %968 = vst [vmem:[#allocation8 + $0xd0] sm:$0xff] %v754_v42  ;;  %v1390_v43 = vpop.f32.mrb[28].mxu1 }
 0x23d   :  { %v769_v44 = vadd.f32 %v1390_v43, %v1766_v51  ;;  %v763_v45 = vpop.f32.mrb[29].mxu1 }
 0x23e   :  { %v764_v46 = vadd.f32 %v1766_v51, %v763_v45 }
 0x23f   :  { %971 = vst [vmem:[#allocation8 + $0xe8] sm:$0xff] %v769_v44 }
 0x240   :  { %970 = vst [vmem:[#allocation8 + $0xe0] sm:$0xff] %v764_v46  ;;  %v1393_v47 = vpop.f32.mrb[30].mxu1 }
 0x241   :  { %v779_v49 = vadd.f32 %v1393_v47, %v1766_v51  ;;  %v773_v50 = vpop.f32.mrb[31].mxu1 }
 0x242   :  { %v774_v52 = vadd.f32 %v1766_v51, %v773_v50 }
 0x243   :  { %973 = vst [vmem:[#allocation8 + $0xf8] sm:$0xff] %v779_v49 }
 0x244   :  { %972 = vst [vmem:[#allocation8 + $0xf0] sm:$0xff] %v774_v52  ;;  %v1396_v53 = vpop.f32.mrb[32].mxu1 }
 0x245   :  { %v789_v54 = vadd.f32 %v1396_v53, %v1766_v51  ;;  %v783_v55 = vpop.f32.mrb[33].mxu1 }
 0x246   :  { %v784_v56 = vadd.f32 %v1766_v51, %v783_v55 }
 0x247   :  { %975 = vst [vmem:[#allocation8 + $0x108] sm:$0xff] %v789_v54 }
 0x248   :  { %974 = vst [vmem:[#allocation8 + $0x100] sm:$0xff] %v784_v56  ;;  %v1399_v57 = vpop.f32.mrb[34].mxu1 }
 0x249   :  { %v799_v58 = vadd.f32 %v1399_v57, %v1766_v51  ;;  %v793_v48 = vpop.f32.mrb[35].mxu1 }
 0x24a   :  { %v794_v59 = vadd.f32 %v1766_v51, %v793_v48 }
 0x24b   :  { %977 = vst [vmem:[#allocation8 + $0x118] sm:$0xff] %v799_v58 }
 0x24c   :  { %976 = vst [vmem:[#allocation8 + $0x110] sm:$0xff] %v794_v59  ;;  %v1402_v60 = vpop.f32.mrb[36].mxu1 }
 0x24d   :  { %v809_v61 = vadd.f32 %v1402_v60, %v1766_v51  ;;  %v803_v62 = vpop.f32.mrb[37].mxu1 }
 0x24e   :  { %v804_v63 = vadd.f32 %v1766_v51, %v803_v62 }
 0x24f   :  { %979 = vst [vmem:[#allocation8 + $0x128] sm:$0xff] %v809_v61 }
 0x250   :  { %978 = vst [vmem:[#allocation8 + $0x120] sm:$0xff] %v804_v63  ;;  %v1405_v0 = vpop.f32.mrb[38].mxu1 }
 0x251   :  { %v819_v1 = vadd.f32 %v1405_v0, %v1766_v51  ;;  %v813_v2 = vpop.f32.mrb[39].mxu1 }
 0x252   :  { %v814_v3 = vadd.f32 %v1766_v51, %v813_v2 }
 0x253   :  { %981 = vst [vmem:[#allocation8 + $0x138] sm:$0xff] %v819_v1 }
 0x254   :  { %980 = vst [vmem:[#allocation8 + $0x130] sm:$0xff] %v814_v3  ;;  %v1408_v4 = vpop.f32.mrb[40].mxu1 }
 0x255   :  { %v829_v5 = vadd.f32 %v1408_v4, %v1766_v51  ;;  %v823_v6 = vpop.f32.mrb[41].mxu1 }
 0x256   :  { %v824_v7 = vadd.f32 %v1766_v51, %v823_v6 }
 0x257   :  { %983 = vst [vmem:[#allocation8 + $0x148] sm:$0xff] %v829_v5 }
 0x258   :  { %982 = vst [vmem:[#allocation8 + $0x140] sm:$0xff] %v824_v7  ;;  %v1411_v8 = vpop.f32.mrb[42].mxu1 }
 0x259   :  { %v839_v9 = vadd.f32 %v1411_v8, %v1766_v51  ;;  %v833_v10 = vpop.f32.mrb[43].mxu1 }
 0x25a   :  { %v834_v11 = vadd.f32 %v1766_v51, %v833_v10 }
 0x25b   :  { %985 = vst [vmem:[#allocation8 + $0x158] sm:$0xff] %v839_v9 }
 0x25c   :  { %984 = vst [vmem:[#allocation8 + $0x150] sm:$0xff] %v834_v11  ;;  %v1414_v12 = vpop.f32.mrb[44].mxu1 }
 0x25d   :  { %v849_v13 = vadd.f32 %v1414_v12, %v1766_v51  ;;  %v843_v14 = vpop.f32.mrb[45].mxu1 }
 0x25e   :  { %v844_v15 = vadd.f32 %v1766_v51, %v843_v14 }
 0x25f   :  { %987 = vst [vmem:[#allocation8 + $0x168] sm:$0xff] %v849_v13 }
 0x260   :  { %986 = vst [vmem:[#allocation8 + $0x160] sm:$0xff] %v844_v15  ;;  %v1417_v16 = vpop.f32.mrb[46].mxu1 }
 0x261   :  { %v859_v17 = vadd.f32 %v1417_v16, %v1766_v51  ;;  %v853_v18 = vpop.f32.mrb[47].mxu1 }
 0x262   :  { %v854_v19 = vadd.f32 %v1766_v51, %v853_v18 }
 0x263   :  { %989 = vst [vmem:[#allocation8 + $0x178] sm:$0xff] %v859_v17 }
 0x264   :  { %988 = vst [vmem:[#allocation8 + $0x170] sm:$0xff] %v854_v19  ;;  %v1420_v20 = vpop.f32.mrb[48].mxu1 }
 0x265   :  { %v869_v21 = vadd.f32 %v1420_v20, %v1766_v51  ;;  %v863_v22 = vpop.f32.mrb[49].mxu1 }
 0x266   :  { %v864_v23 = vadd.f32 %v1766_v51, %v863_v22 }
 0x267   :  { %991 = vst [vmem:[#allocation8 + $0x188] sm:$0xff] %v869_v21 }
 0x268   :  { %990 = vst [vmem:[#allocation8 + $0x180] sm:$0xff] %v864_v23  ;;  %v1423_v24 = vpop.f32.mrb[50].mxu1 }
 0x269   :  { %v879_v25 = vadd.f32 %v1423_v24, %v1766_v51  ;;  %v873_v26 = vpop.f32.mrb[51].mxu1 }
 0x26a   :  { %v874_v27 = vadd.f32 %v1766_v51, %v873_v26 }
 0x26b   :  { %993 = vst [vmem:[#allocation8 + $0x198] sm:$0xff] %v879_v25 }
 0x26c   :  { %992 = vst [vmem:[#allocation8 + $0x190] sm:$0xff] %v874_v27  ;;  %v1426_v28 = vpop.f32.mrb[52].mxu1 }
 0x26d   :  { %v889_v29 = vadd.f32 %v1426_v28, %v1766_v51  ;;  %v883_v30 = vpop.f32.mrb[53].mxu1 }
 0x26e   :  { %v884_v31 = vadd.f32 %v1766_v51, %v883_v30 }
 0x26f   :  { %995 = vst [vmem:[#allocation8 + $0x1a8] sm:$0xff] %v889_v29 }
 0x270   :  { %994 = vst [vmem:[#allocation8 + $0x1a0] sm:$0xff] %v884_v31  ;;  %v1429_v32 = vpop.f32.mrb[54].mxu1 }
 0x271   :  { %v899_v33 = vadd.f32 %v1429_v32, %v1766_v51  ;;  %v893_v34 = vpop.f32.mrb[55].mxu1 }
 0x272   :  { %v894_v35 = vadd.f32 %v1766_v51, %v893_v34 }
 0x273   :  { %997 = vst [vmem:[#allocation8 + $0x1b8] sm:$0xff] %v899_v33 }
 0x274   :  { %996 = vst [vmem:[#allocation8 + $0x1b0] sm:$0xff] %v894_v35  ;;  %v1432_v36 = vpop.f32.mrb[56].mxu1 }
 0x275   :  { %v909_v37 = vadd.f32 %v1432_v36, %v1766_v51  ;;  %v903_v38 = vpop.f32.mrb[57].mxu1 }
 0x276   :  { %v904_v39 = vadd.f32 %v1766_v51, %v903_v38 }
 0x277   :  { %999 = vst [vmem:[#allocation8 + $0x1c8] sm:$0xff] %v909_v37 }
 0x278   :  { %998 = vst [vmem:[#allocation8 + $0x1c0] sm:$0xff] %v904_v39  ;;  %v1435_v40 = vpop.f32.mrb[58].mxu1 }
 0x279   :  { %v919_v41 = vadd.f32 %v1435_v40, %v1766_v51  ;;  %v913_v42 = vpop.f32.mrb[59].mxu1 }
 0x27a   :  { %v914_v43 = vadd.f32 %v1766_v51, %v913_v42 }
 0x27b   :  { %1001 = vst [vmem:[#allocation8 + $0x1d8] sm:$0xff] %v919_v41 }
 0x27c   :  { %1000 = vst [vmem:[#allocation8 + $0x1d0] sm:$0xff] %v914_v43  ;;  %v1438_v44 = vpop.f32.mrb[60].mxu1 }
 0x27d   :  { %v929_v45 = vadd.f32 %v1438_v44, %v1766_v51  ;;  %v923_v46 = vpop.f32.mrb[61].mxu1 }
 0x27e   :  { %v924_v47 = vadd.f32 %v1766_v51, %v923_v46 }
 0x27f   :  { %1003 = vst [vmem:[#allocation8 + $0x1e8] sm:$0xff] %v929_v45 }
 0x280   :  { %1002 = vst [vmem:[#allocation8 + $0x1e0] sm:$0xff] %v924_v47  ;;  %v1441_v49 = vpop.f32.mrb[62].mxu1 }
 0x281   :  { %v939_v50 = vadd.f32 %v1441_v49, %v1766_v51  ;;  %v933_v52 = vpop.f32.mrb[63].mxu1 }
 0x282   :  { %v934_v53 = vadd.f32 %v1766_v51, %v933_v52 }
 0x283   :  { %1005 = vst [vmem:[#allocation8 + $0x1f8] sm:$0xff] %v939_v50 }
 0x284   :  { %1004 = vst [vmem:[#allocation8 + $0x1f0] sm:$0xff] %v934_v53 }
 0x285   :  { %1589 = shalt.err (!%p1586_p0)
}
 0x286   :  { %s1590_s12 = scalar_lea.hbm %s1852_s5, 8192 }
 0x287   :  { %p1591_p1 = scmp.ne.s32.totalorder %s1852_s5, %s1590_s12  ;;  %p1594_p2 = scmp.lt.u32.totalorder %s1590_s12, %s1852_s5 }
 0x289   :  { %p1596_p3 = pnand %p1594_p2, %p1591_p1 }
 0x28b   :  { %1599 = shalt.err (!%p1596_p3)
}
 0x28c   :  { %1017 = dma.vmem_to_hbm [thread:$0]  %s1012_s8, 8192, %s1852_s5, [#allocation4], %s1608_s30, %s1608_s30, %s1609_s6  }
 0x28d   :  { %1604 = dma.done.wait [#allocation4], 8192  }
 0x28e   :  { %1605 = vsyncadd [#allocation4], 4294959104 }
 0x28f   :  { %1021 = vsyncpa [#allocation3], 1 }
 0x290   :  { %1022 = vsyncpa [#allocation6], 1 }
 0x291   :  { %1023 = vsyncpa [#allocation4], 1 }

// kernel: tpu_custom_call.1
= control target key start
LH: loop header
LB: loop body
LE: loop exit
PB: predicated region body
PF: predicated region fallthrough
CT: control target
= control target key end

     0   :  { %10 = vsyncpa [#allocation3], 0  ;;  %s1847_s0 = inlined_call_operand.hbm [shape: f32[512,128], index: 0, kind: input, shape index: {}]   ;;  %s1848_s1 = inlined_call_operand.hbm [shape: f32[128,128], index: 1, kind: input, shape index: {}]   ;;  %s1849_s2 = inlined_call_operand.vmem [shape: f32[1,128], index: 2, kind: input, shape index: {}]   ;;  %s1850_s3 = inlined_call_operand.hbm [shape: f32[128,128], index: 3, kind: input, shape index: {}]   ;;  %s1851_s4 = inlined_call_operand.vmem [shape: f32[1,128], index: 4, kind: input, shape index: {}]   ;;  %s1852_s5 = inlined_call_operand.hbm [shape: f32[512,128], index: 5, kind: output, shape index: {}]  }
   0x1   :  { %11 = vsyncpa [#allocation6], 0 }
   0x2   :  { %12 = vsyncpa [#allocation4], 0  ;;  %s1606_s18 = smov [#allocation5]   ;;  %s1607_s20 = smov [#allocation2]  }
   0x3   :  { %s30_s19 = sshll.u32 %s1606_s18, 4  ;;  %s18_s21 = sshll.u32 %s1607_s20, 4  ;;  %s31_s19 = int_to_ptr.vmem [resolvable:$true] %s30_s19  ;;  %s1642_s21 = int_to_ptr.vmem [resolvable:$true] %s18_s21 }
   0x4   :  { %s1512_s24 = scalar_lea.hbm %s1848_s1, 2048 }
   0x5   :  { %p1513_p0 = scmp.ne.s32.totalorder %s1848_s1, %s1512_s24  ;;  %p1516_p1 = scmp.lt.u32.totalorder %s1512_s24, %s1848_s1 }
   0x7   :  { %p1518_p2 = pnand %p1516_p1, %p1513_p0 }
   0x9   :  { %1521 = shalt.err (!%p1518_p2)
}
   0xa   :  { %s1522_s29 = scalar_lea.vmem %s31_s19, 2048  ;;  %p1527_p4 = scmp.lt.s32.totalorder %s31_s19, %s31_s19 }
   0xb   :  { %p1523_p3 = scmp.ne.s32.totalorder %s31_s19, %s1522_s29  ;;  %p1528_p5 = scmp.lt.s32.totalorder %s1522_s29, %s1522_s29 }
   0xd   :  { %p1529_p6 = por %p1528_p5, %p1527_p4 }
   0xf   :  { %p1530_p7 = pnand %p1529_p6, %p1523_p3 }
  0x11   :  { %1533 = shalt.err (!%p1530_p7)
}
  0x12   :  { %s1608_s30 = smov 128   ;;  %s1609_s6 = smov 8  }
  0x13   :  { %36 = dma.hbm_to_vmem [thread:$0]  %s1848_s1, 2048, %s31_s19, [#allocation6], %s1608_s30, %s1608_s30, %s1609_s6  }
  0x14   :  { %s1534_s11 = scalar_lea.hbm %s1847_s0, 8192 }
  0x15   :  { %p1535_p8 = scmp.ne.s32.totalorder %s1847_s0, %s1534_s11  ;;  %p1538_p9 = scmp.lt.u32.totalorder %s1534_s11, %s1847_s0 }
  0x17   :  { %p1540_p10 = pnand %p1538_p9, %p1535_p8 }
  0x19   :  { %1543 = shalt.err (!%p1540_p10)
}
  0x1a   :  { %s1544_s16 = scalar_lea.vmem %s1642_s21, 8192  ;;  %p1549_p12 = scmp.lt.s32.totalorder %s1642_s21, %s1642_s21 }
  0x1b   :  { %p1545_p11 = scmp.ne.s32.totalorder %s1642_s21, %s1544_s16  ;;  %p1550_p13 = scmp.lt.s32.totalorder %s1544_s16, %s1544_s16 }
  0x1d   :  { %p1551_p0 = por %p1550_p13, %p1549_p12 }
  0x1f   :  { %p1552_p1 = pnand %p1551_p0, %p1545_p11 }
  0x21   :  { %1555 = shalt.err (!%p1552_p1)
}
  0x22   :  { %24 = dma.hbm_to_vmem [thread:$0]  %s1847_s0, 8192, %s1642_s21, [#allocation3], %s1608_s30, %s1608_s30, %s1609_s6  }
  0x23   :  { %s1610_s18 = smov [#allocation7]   ;;  %s1556_s23 = scalar_lea.hbm %s1850_s3, 2048 }
  0x24   :  { %s44_s19 = sshll.u32 %s1610_s18, 4  ;;  %p1557_p2 = scmp.ne.s32.totalorder %s1850_s3, %s1556_s23  ;;  %s45_s19 = int_to_ptr.vmem [resolvable:$true] %s44_s19 }
  0x25   :  { %p1560_p3 = scmp.lt.u32.totalorder %s1556_s23, %s1850_s3 }
  0x27   :  { %p1562_p4 = pnand %p1560_p3, %p1557_p2 }
  0x29   :  { %1565 = shalt.err (!%p1562_p4)
}
  0x2a   :  { %s1566_s28 = scalar_lea.vmem %s45_s19, 2048  ;;  %p1571_p6 = scmp.lt.s32.totalorder %s45_s19, %s45_s19 }
  0x2b   :  { %p1567_p5 = scmp.ne.s32.totalorder %s45_s19, %s1566_s28  ;;  %p1572_p7 = scmp.lt.s32.totalorder %s1566_s28, %s1566_s28 }
  0x2d   :  { %p1573_p8 = por %p1572_p7, %p1571_p6 }
  0x2f   :  { %p1574_p9 = pnand %p1573_p8, %p1567_p5 }
  0x31   :  { %1577 = shalt.err (!%p1574_p9)
}
  0x32   :  { %50 = dma.hbm_to_vmem [thread:$0]  %s1850_s3, 2048, %s45_s19, [#allocation6], %s1608_s30, %s1608_s30, %s1609_s6  }
  0x33   :  { %1600 = dma.done.wait [#allocation3], 8192  }
  0x34   :  { %1601 = vsyncadd [#allocation3], 4294959104 }
  0x35   :  { %1602 = dma.done.wait [#allocation6], 4096  }
  0x36   :  { %1603 = vsyncadd [#allocation6], 4294963200  ;;  %v126_v0 = vld [vmem:[#allocation5] sm:$0xff]  ;;  %v127_v1 = vld [vmem:[#allocation5 + $0x8] sm:$0xff] }
  0x37   :  { %v128_v2 = vld [vmem:[#allocation5 + $0x10] sm:$0xff]  ;;  %v1442_v3 = vpack.c.bf16 %v127_v1, %v126_v0  ;;  %v129_v4 = vld [vmem:[#allocation5 + $0x18] sm:$0xff]  ;;  %v130_v6 = vld [vmem:[#allocation5 + $0x20] sm:$0xff] }
  0x38   :  { %v1446_v5 = vpack.c.bf16 %v129_v4, %v128_v2  ;;  %v131_v7 = vld [vmem:[#allocation5 + $0x28] sm:$0xff]  ;;  %v62_v9 = vld [vmem:[#allocation2] sm:$0xff]  ;;  %v132_v10 = vld [vmem:[#allocation5 + $0x30] sm:$0xff] }
  0x39   :  { %1443 = vmatprep.subr.bf16.mxu0 %v1442_v3  ;;  %v1450_v8 = vpack.c.bf16 %v131_v7, %v130_v6  ;;  %v133_v11 = vld [vmem:[#allocation5 + $0x38] sm:$0xff]  ;;  %1218 = vmatprep.mubr.f32.mxu0 %v62_v9  ;;  %v134_v13 = vld [vmem:[#allocation5 + $0x40] sm:$0xff]  ;;  %v135_v14 = vld [vmem:[#allocation5 + $0x48] sm:$0xff] }
  0x3a   :  { %1445 = vmatpush3.bf16.msra.mxu0 %v1442_v3  ;;  %v1454_v12 = vpack.c.bf16 %v133_v11, %v132_v10  ;;  %v1458_v15 = vpack.c.bf16 %v135_v14, %v134_v13  ;;  %v136_v16 = vld [vmem:[#allocation5 + $0x50] sm:$0xff]  ;;  %v137_v17 = vld [vmem:[#allocation5 + $0x58] sm:$0xff]  ;;  %v138_v19 = vld [vmem:[#allocation5 + $0x60] sm:$0xff] }
  0x3b   :  { %1447 = vmatprep.subr.bf16.mxu0 %v1446_v5  ;;  %v1462_v18 = vpack.c.bf16 %v137_v17, %v136_v16  ;;  %v139_v20 = vld [vmem:[#allocation5 + $0x68] sm:$0xff]  ;;  %v140_v22 = vld [vmem:[#allocation5 + $0x70] sm:$0xff]  ;;  %v141_v23 = vld [vmem:[#allocation5 + $0x78] sm:$0xff] }
  0x3c   :  { %v1466_v21 = vpack.c.bf16 %v139_v20, %v138_v19  ;;  %v1470_v24 = vpack.c.bf16 %v141_v23, %v140_v22  ;;  %v534_v25 = vld [vmem:[#allocation7] sm:$0xff]  ;;  %v535_v26 = vld [vmem:[#allocation7 + $0x8] sm:$0xff]  ;;  %v536_v27 = vld [vmem:[#allocation7 + $0x10] sm:$0xff] }
  0x3d   :  { %v63_v28 = vld [vmem:[#allocation2 + $0x8] sm:$0xff]  ;;  %v1474_v29 = vpack.c.bf16 %v535_v26, %v534_v25  ;;  %v537_v30 = vld [vmem:[#allocation7 + $0x18] sm:$0xff]  ;;  %v64_v31 = vld [vmem:[#allocation2 + $0x10] sm:$0xff] }
  0x3e   :  { %1449 = vmatpush3.bf16.msra.mxu0 %v1446_v5  ;;  %v1478_v32 = vpack.c.bf16 %v537_v30, %v536_v27  ;;  %v538_v33 = vld [vmem:[#allocation7 + $0x20] sm:$0xff]  ;;  %v539_v34 = vld [vmem:[#allocation7 + $0x28] sm:$0xff]  ;;  %v65_v35 = vld [vmem:[#allocation2 + $0x18] sm:$0xff] }
  0x3f   :  { %1451 = vmatprep.subr.bf16.mxu0 %v1450_v8  ;;  %1475 = vmatprep.subr.bf16.mxu1 %v1474_v29  ;;  %v1482_v36 = vpack.c.bf16 %v539_v34, %v538_v33  ;;  %v66_v37 = vld [vmem:[#allocation2 + $0x20] sm:$0xff]  ;;  %v540_v38 = vld [vmem:[#allocation7 + $0x30] sm:$0xff]  ;;  %v541_v39 = vld [vmem:[#allocation7 + $0x38] sm:$0xff] }
  0x40   :  { %1477 = vmatpush3.bf16.msra.mxu1 %v1474_v29  ;;  %v67_v40 = vld [vmem:[#allocation2 + $0x28] sm:$0xff]  ;;  %v1486_v41 = vpack.c.bf16 %v541_v39, %v540_v38  ;;  %v68_v42 = vld [vmem:[#allocation2 + $0x30] sm:$0xff]  ;;  %v542_v43 = vld [vmem:[#allocation7 + $0x40] sm:$0xff] }
  0x41   :  { %1479 = vmatprep.subr.bf16.mxu1 %v1478_v32  ;;  %v543_v44 = vld [vmem:[#allocation7 + $0x48] sm:$0xff]  ;;  %v69_v45 = vld [vmem:[#allocation2 + $0x38] sm:$0xff]  ;;  %v70_v47 = vld [vmem:[#allocation2 + $0x40] sm:$0xff] }
  0x42   :  { %1453 = vmatpush3.bf16.msra.mxu0 %v1450_v8  ;;  %v1490_v46 = vpack.c.bf16 %v543_v44, %v542_v43  ;;  %v544_v48 = vld [vmem:[#allocation7 + $0x50] sm:$0xff]  ;;  %v545_v49 = vld [vmem:[#allocation7 + $0x58] sm:$0xff]  ;;  %v71_v50 = vld [vmem:[#allocation2 + $0x48] sm:$0xff] }
  0x43   :  { %1455 = vmatprep.subr.bf16.mxu0 %v1454_v12  ;;  %v1494_v51 = vpack.c.bf16 %v545_v49, %v544_v48  ;;  %v72_v52 = vld [vmem:[#allocation2 + $0x50] sm:$0xff]  ;;  %v546_v53 = vld [vmem:[#allocation7 + $0x60] sm:$0xff]  ;;  %v547_v54 = vld [vmem:[#allocation7 + $0x68] sm:$0xff] }
  0x44   :  { %1481 = vmatpush3.bf16.msra.mxu1 %v1478_v32  ;;  %v73_v55 = vld [vmem:[#allocation2 + $0x58] sm:$0xff]  ;;  %v1498_v56 = vpack.c.bf16 %v547_v54, %v546_v53  ;;  %v74_v57 = vld [vmem:[#allocation2 + $0x60] sm:$0xff]  ;;  %v75_v58 = vld [vmem:[#allocation2 + $0x68] sm:$0xff] }
  0x45   :  { %1483 = vmatprep.subr.bf16.mxu1 %v1482_v36  ;;  %v76_v59 = vld [vmem:[#allocation2 + $0x70] sm:$0xff]  ;;  %v77_v60 = vld [vmem:[#allocation2 + $0x78] sm:$0xff]  ;;  %v78_v61 = vld [vmem:[#allocation2 + $0x80] sm:$0xff] }
  0x46   :  { %1457 = vmatpush3.bf16.msra.mxu0 %v1454_v12  ;;  %v79_v62 = vld [vmem:[#allocation2 + $0x88] sm:$0xff]  ;;  %v80_v63 = vld [vmem:[#allocation2 + $0x90] sm:$0xff]  ;;  %v81_v0 = vld [vmem:[#allocation2 + $0x98] sm:$0xff] }
  0x47   :  { %1459 = vmatprep.subr.bf16.mxu0 %v1458_v15  ;;  %v82_v1 = vld [vmem:[#allocation2 + $0xa0] sm:$0xff]  ;;  %v83_v2 = vld [vmem:[#allocation2 + $0xa8] sm:$0xff]  ;;  %v84_v3 = vld [vmem:[#allocation2 + $0xb0] sm:$0xff] }
  0x48   :  { %1485 = vmatpush3.bf16.msra.mxu1 %v1482_v36  ;;  %v85_v4 = vld [vmem:[#allocation2 + $0xb8] sm:$0xff]  ;;  %v86_v5 = vld [vmem:[#allocation2 + $0xc0] sm:$0xff]  ;;  %v87_v6 = vld [vmem:[#allocation2 + $0xc8] sm:$0xff] }
  0x49   :  { %1487 = vmatprep.subr.bf16.mxu1 %v1486_v41  ;;  %v88_v7 = vld [vmem:[#allocation2 + $0xd0] sm:$0xff]  ;;  %v89_v8 = vld [vmem:[#allocation2 + $0xd8] sm:$0xff]  ;;  %v90_v9 = vld [vmem:[#allocation2 + $0xe0] sm:$0xff] }
  0x4a   :  { %1461 = vmatpush3.bf16.msra.mxu0 %v1458_v15  ;;  %v91_v10 = vld [vmem:[#allocation2 + $0xe8] sm:$0xff]  ;;  %v92_v11 = vld [vmem:[#allocation2 + $0xf0] sm:$0xff]  ;;  %v93_v12 = vld [vmem:[#allocation2 + $0xf8] sm:$0xff] }
  0x4b   :  { %1463 = vmatprep.subr.bf16.mxu0 %v1462_v18  ;;  %v94_v13 = vld [vmem:[#allocation2 + $0x100] sm:$0xff]  ;;  %v95_v14 = vld [vmem:[#allocation2 + $0x108] sm:$0xff]  ;;  %v96_v15 = vld [vmem:[#allocation2 + $0x110] sm:$0xff] }
  0x4c   :  { %1489 = vmatpush3.bf16.msra.mxu1 %v1486_v41  ;;  %v97_v16 = vld [vmem:[#allocation2 + $0x118] sm:$0xff]  ;;  %v98_v17 = vld [vmem:[#allocation2 + $0x120] sm:$0xff]  ;;  %v100_v19 = vld [vmem:[#allocation2 + $0x130] sm:$0xff] }
  0x4d   :  { %1491 = vmatprep.subr.bf16.mxu1 %v1490_v46  ;;  %v101_v20 = vld [vmem:[#allocation2 + $0x138] sm:$0xff]  ;;  %v103_v22 = vld [vmem:[#allocation2 + $0x148] sm:$0xff]  ;;  %v104_v23 = vld [vmem:[#allocation2 + $0x150] sm:$0xff] }
  0x4e   :  { %1465 = vmatpush3.bf16.msra.mxu0 %v1462_v18  ;;  %v99_v18 = vld [vmem:[#allocation2 + $0x128] sm:$0xff]  ;;  %v548_v25 = vld [vmem:[#allocation7 + $0x70] sm:$0xff]  ;;  %v549_v26 = vld [vmem:[#allocation7 + $0x78] sm:$0xff] }
  0x4f   :  { %1467 = vmatprep.subr.bf16.mxu0 %v1466_v21  ;;  %v106_v27 = vld [vmem:[#allocation2 + $0x160] sm:$0xff]  ;;  %v107_v29 = vld [vmem:[#allocation2 + $0x168] sm:$0xff]  ;;  %v108_v30 = vld [vmem:[#allocation2 + $0x170] sm:$0xff] }
  0x50   :  { %1493 = vmatpush3.bf16.msra.mxu1 %v1490_v46  ;;  %v110_v32 = vld [vmem:[#allocation2 + $0x180] sm:$0xff]  ;;  %v111_v33 = vld [vmem:[#allocation2 + $0x188] sm:$0xff]  ;;  %v112_v34 = vld [vmem:[#allocation2 + $0x190] sm:$0xff] }
  0x51   :  { %1495 = vmatprep.subr.bf16.mxu1 %v1494_v51  ;;  %v114_v36 = vld [vmem:[#allocation2 + $0x1a0] sm:$0xff]  ;;  %v116_v38 = vld [vmem:[#allocation2 + $0x1b0] sm:$0xff]  ;;  %v117_v39 = vld [vmem:[#allocation2 + $0x1b8] sm:$0xff] }
  0x52   :  { %1469 = vmatpush3.bf16.msra.mxu0 %v1466_v21  ;;  %v102_v21 = vld [vmem:[#allocation2 + $0x140] sm:$0xff]  ;;  %v119_v41 = vld [vmem:[#allocation2 + $0x1c8] sm:$0xff]  ;;  %v121_v43 = vld [vmem:[#allocation2 + $0x1d8] sm:$0xff] }
  0x53   :  { %1471 = vmatprep.subr.bf16.mxu0 %v1470_v24  ;;  %v122_v44 = vld [vmem:[#allocation2 + $0x1e0] sm:$0xff]  ;;  %v124_v46 = vld [vmem:[#allocation2 + $0x1f0] sm:$0xff] }
  0x54   :  { %1497 = vmatpush3.bf16.msra.mxu1 %v1494_v51  ;;  %v1697_v48 = vld [vmem:[%s1849_s2] ss:$0 sm:$0xff] }
  0x55   :  { %1499 = vmatprep.subr.bf16.mxu1 %v1498_v56 }
  0x56   :  { %1473 = vmatpush3.bf16.msra.mxu0 %v1470_v24  ;;  %v105_v24 = vld [vmem:[#allocation2 + $0x158] sm:$0xff] }
  0x58   :  { %1501 = vmatpush3.bf16.msra.mxu1 %v1498_v56 }
  0x59   :  { %1219 = vmatmul.mubr.f32.vlgmr.msra.gmra.mrb[0].mxu0 %v63_v28  ;;  %v1502_v28 = vpack.c.bf16 %v549_v26, %v548_v25 }
  0x5a   :  { %1221 = vmatprep.mubr.f32.mxu0 %v64_v31  ;;  %v109_v31 = vld [vmem:[#allocation2 + $0x178] sm:$0xff] }
  0x5b   :  { %1503 = vmatprep.subr.bf16.mxu1 %v1502_v28 }
  0x5c   :  { %1505 = vmatpush3.bf16.msra.mxu1 %v1502_v28 }
  0x5d   :  { %1222 = vmatmul.mubr.f32.gmra.mrb[2].mxu0 %v65_v35  ;;  %v113_v35 = vld [vmem:[#allocation2 + $0x198] sm:$0xff] }
  0x5e   :  { %1224 = vmatprep.mubr.f32.mxu0 %v66_v37  ;;  %v115_v37 = vld [vmem:[#allocation2 + $0x1a8] sm:$0xff] }
  0x61   :  { %1225 = vmatmul.mubr.f32.gmra.mrb[4].mxu0 %v67_v40  ;;  %v118_v40 = vld [vmem:[#allocation2 + $0x1c0] sm:$0xff] }
  0x62   :  { %1227 = vmatprep.mubr.f32.mxu0 %v68_v42  ;;  %v120_v42 = vld [vmem:[#allocation2 + $0x1d0] sm:$0xff] }
  0x65   :  { %1228 = vmatmul.mubr.f32.gmra.mrb[6].mxu0 %v69_v45  ;;  %v123_v45 = vld [vmem:[#allocation2 + $0x1e8] sm:$0xff] }
  0x66   :  { %1230 = vmatprep.mubr.f32.mxu0 %v70_v47  ;;  %v125_v47 = vld [vmem:[#allocation2 + $0x1f8] sm:$0xff] }
  0x69   :  { %1231 = vmatmul.mubr.f32.gmra.mrb[8].mxu0 %v71_v50 }
  0x6a   :  { %1233 = vmatprep.mubr.f32.mxu0 %v72_v52 }
  0x6d   :  { %1234 = vmatmul.mubr.f32.gmra.mrb[10].mxu0 %v73_v55 }
  0x6e   :  { %1236 = vmatprep.mubr.f32.mxu0 %v74_v57 }
  0x71   :  { %1237 = vmatmul.mubr.f32.gmra.mrb[12].mxu0 %v75_v58 }
  0x72   :  { %1239 = vmatprep.mubr.f32.mxu0 %v76_v59 }
  0x75   :  { %1240 = vmatmul.mubr.f32.gmra.mrb[14].mxu0 %v77_v60 }
  0x76   :  { %1242 = vmatprep.mubr.f32.mxu0 %v78_v61 }
  0x79   :  { %1243 = vmatmul.mubr.f32.gmra.mrb[16].mxu0 %v79_v62 }
  0x7a   :  { %1245 = vmatprep.mubr.f32.mxu0 %v80_v63 }
  0x7d   :  { %1246 = vmatmul.mubr.f32.gmra.mrb[18].mxu0 %v81_v0 }
  0x7e   :  { %1248 = vmatprep.mubr.f32.mxu0 %v82_v1 }
  0x81   :  { %1249 = vmatmul.mubr.f32.gmra.mrb[20].mxu0 %v83_v2 }
  0x82   :  { %1251 = vmatprep.mubr.f32.mxu0 %v84_v3 }
  0x85   :  { %1252 = vmatmul.mubr.f32.gmra.mrb[22].mxu0 %v85_v4 }
  0x86   :  { %1254 = vmatprep.mubr.f32.mxu0 %v86_v5 }
  0x89   :  { %1255 = vmatmul.mubr.f32.gmra.mrb[24].mxu0 %v87_v6 }
  0x8a   :  { %1257 = vmatprep.mubr.f32.mxu0 %v88_v7 }
  0x8d   :  { %1258 = vmatmul.mubr.f32.gmra.mrb[26].mxu0 %v89_v8 }
  0x8e   :  { %1260 = vmatprep.mubr.f32.mxu0 %v90_v9 }
  0x91   :  { %1261 = vmatmul.mubr.f32.gmra.mrb[28].mxu0 %v91_v10 }
  0x92   :  { %1263 = vmatprep.mubr.f32.mxu0 %v92_v11 }
  0x95   :  { %1264 = vmatmul.mubr.f32.gmra.mrb[30].mxu0 %v93_v12 }
  0x96   :  { %1266 = vmatprep.mubr.f32.mxu0 %v94_v13 }
  0x99   :  { %1267 = vmatmul.mubr.f32.gmra.mrb[32].mxu0 %v95_v14 }
  0x9a   :  { %1269 = vmatprep.mubr.f32.mxu0 %v96_v15 }
  0x9d   :  { %1270 = vmatmul.mubr.f32.gmra.mrb[34].mxu0 %v97_v16 }
  0x9e   :  { %1272 = vmatprep.mubr.f32.mxu0 %v98_v17 }
  0xa1   :  { %1273 = vmatmul.mubr.f32.gmra.mrb[36].mxu0 %v99_v18 }
  0xa2   :  { %1275 = vmatprep.mubr.f32.mxu0 %v100_v19 }
  0xa5   :  { %1276 = vmatmul.mubr.f32.gmra.mrb[38].mxu0 %v101_v20 }
  0xa6   :  { %1278 = vmatprep.mubr.f32.mxu0 %v102_v21 }
  0xa9   :  { %1279 = vmatmul.mubr.f32.gmra.mrb[40].mxu0 %v103_v22 }
  0xaa   :  { %1281 = vmatprep.mubr.f32.mxu0 %v104_v23 }
  0xad   :  { %1282 = vmatmul.mubr.f32.gmra.mrb[42].mxu0 %v105_v24 }
  0xae   :  { %1284 = vmatprep.mubr.f32.mxu0 %v106_v27 }
  0xb1   :  { %1285 = vmatmul.mubr.f32.gmra.mrb[44].mxu0 %v107_v29 }
  0xb2   :  { %1287 = vmatprep.mubr.f32.mxu0 %v108_v30 }
  0xb5   :  { %1288 = vmatmul.mubr.f32.gmra.mrb[46].mxu0 %v109_v31 }
  0xb6   :  { %1290 = vmatprep.mubr.f32.mxu0 %v110_v32 }
  0xb9   :  { %1291 = vmatmul.mubr.f32.gmra.mrb[48].mxu0 %v111_v33 }
  0xba   :  { %1293 = vmatprep.mubr.f32.mxu0 %v112_v34 }
  0xbd   :  { %1294 = vmatmul.mubr.f32.gmra.mrb[50].mxu0 %v113_v35 }
  0xbe   :  { %1296 = vmatprep.mubr.f32.mxu0 %v114_v36 }
  0xc1   :  { %1297 = vmatmul.mubr.f32.gmra.mrb[52].mxu0 %v115_v37 }
  0xc2   :  { %1299 = vmatprep.mubr.f32.mxu0 %v116_v38 }
  0xc5   :  { %1300 = vmatmul.mubr.f32.gmra.mrb[54].mxu0 %v117_v39 }
  0xc6   :  { %1302 = vmatprep.mubr.f32.mxu0 %v118_v40 }
  0xc9   :  { %1303 = vmatmul.mubr.f32.gmra.mrb[56].mxu0 %v119_v41 }
  0xca   :  { %1305 = vmatprep.mubr.f32.mxu0 %v120_v42 }
  0xcd   :  { %1306 = vmatmul.mubr.f32.gmra.mrb[58].mxu0 %v121_v43 }
  0xce   :  { %1308 = vmatprep.mubr.f32.mxu0 %v122_v44 }
  0xd1   :  { %1309 = vmatmul.mubr.f32.gmra.mrb[60].mxu0 %v123_v45 }
  0xd2   :  { %1311 = vmatprep.mubr.f32.mxu0 %v124_v46 }
  0xd5   :  { %1312 = vmatmul.mubr.f32.gmra.mrb[62].mxu0 %v125_v47 }
 0x12c   :  { %v1220_v49 = vpop.f32.mrb[0].mxu0 }
 0x12d   :  { %v215_v50 = vpop.f32.mrb[1].mxu0  ;;  %v221_v52 = vadd.f32 %v1220_v49, %v1697_v48 }
 0x12e   :  { %v216_v51 = vadd.f32 %v1697_v48, %v215_v50 }
 0x130   :  { %v1223_v53 = vpop.f32.mrb[2].mxu0  ;;  %1346 = vmatprep.mubr.f32.mxu1 %v216_v51 }
 0x131   :  { %v225_v54 = vpop.f32.mrb[3].mxu0  ;;  %1347 = vmatmul.mubr.f32.vlgmr.msra.gmra.mrb[0].mxu1 %v221_v52  ;;  %v231_v56 = vadd.f32 %v1223_v53, %v1697_v48 }
 0x132   :  { %v226_v55 = vadd.f32 %v1697_v48, %v225_v54 }
 0x134   :  { %v1226_v57 = vpop.f32.mrb[4].mxu0  ;;  %1349 = vmatprep.mubr.f32.mxu1 %v226_v55 }
 0x135   :  { %v235_v58 = vpop.f32.mrb[5].mxu0  ;;  %1350 = vmatmul.mubr.f32.gmra.mrb[2].mxu1 %v231_v56  ;;  %v241_v60 = vadd.f32 %v1226_v57, %v1697_v48 }
 0x136   :  { %v236_v59 = vadd.f32 %v1697_v48, %v235_v58 }
 0x138   :  { %v1229_v61 = vpop.f32.mrb[6].mxu0  ;;  %1352 = vmatprep.mubr.f32.mxu1 %v236_v59 }
 0x139   :  { %v245_v62 = vpop.f32.mrb[7].mxu0  ;;  %1353 = vmatmul.mubr.f32.gmra.mrb[4].mxu1 %v241_v60  ;;  %v251_v0 = vadd.f32 %v1229_v61, %v1697_v48 }
 0x13a   :  { %v246_v63 = vadd.f32 %v1697_v48, %v245_v62 }
 0x13c   :  { %v1232_v1 = vpop.f32.mrb[8].mxu0  ;;  %1355 = vmatprep.mubr.f32.mxu1 %v246_v63 }
 0x13d   :  { %v255_v2 = vpop.f32.mrb[9].mxu0  ;;  %1356 = vmatmul.mubr.f32.gmra.mrb[6].mxu1 %v251_v0  ;;  %v261_v4 = vadd.f32 %v1232_v1, %v1697_v48 }
 0x13e   :  { %v256_v3 = vadd.f32 %v1697_v48, %v255_v2 }
 0x140   :  { %v1235_v5 = vpop.f32.mrb[10].mxu0  ;;  %1358 = vmatprep.mubr.f32.mxu1 %v256_v3 }
 0x141   :  { %v265_v6 = vpop.f32.mrb[11].mxu0  ;;  %1359 = vmatmul.mubr.f32.gmra.mrb[8].mxu1 %v261_v4  ;;  %v271_v8 = vadd.f32 %v1235_v5, %v1697_v48 }
 0x142   :  { %v266_v7 = vadd.f32 %v1697_v48, %v265_v6 }
 0x144   :  { %v1238_v9 = vpop.f32.mrb[12].mxu0  ;;  %1361 = vmatprep.mubr.f32.mxu1 %v266_v7 }
 0x145   :  { %v275_v10 = vpop.f32.mrb[13].mxu0  ;;  %1362 = vmatmul.mubr.f32.gmra.mrb[10].mxu1 %v271_v8  ;;  %v281_v12 = vadd.f32 %v1238_v9, %v1697_v48 }
 0x146   :  { %v276_v11 = vadd.f32 %v1697_v48, %v275_v10 }
 0x148   :  { %v1241_v13 = vpop.f32.mrb[14].mxu0  ;;  %1364 = vmatprep.mubr.f32.mxu1 %v276_v11 }
 0x149   :  { %v285_v14 = vpop.f32.mrb[15].mxu0  ;;  %1365 = vmatmul.mubr.f32.gmra.mrb[12].mxu1 %v281_v12  ;;  %v291_v16 = vadd.f32 %v1241_v13, %v1697_v48 }
 0x14a   :  { %v286_v15 = vadd.f32 %v1697_v48, %v285_v14 }
 0x14c   :  { %v1244_v17 = vpop.f32.mrb[16].mxu0  ;;  %1367 = vmatprep.mubr.f32.mxu1 %v286_v15 }
 0x14d   :  { %v295_v18 = vpop.f32.mrb[17].mxu0  ;;  %1368 = vmatmul.mubr.f32.gmra.mrb[14].mxu1 %v291_v16  ;;  %v301_v20 = vadd.f32 %v1244_v17, %v1697_v48 }
 0x14e   :  { %v296_v19 = vadd.f32 %v1697_v48, %v295_v18 }
 0x150   :  { %v1247_v21 = vpop.f32.mrb[18].mxu0  ;;  %1370 = vmatprep.mubr.f32.mxu1 %v296_v19 }
 0x151   :  { %v305_v22 = vpop.f32.mrb[19].mxu0  ;;  %1371 = vmatmul.mubr.f32.gmra.mrb[16].mxu1 %v301_v20  ;;  %v311_v24 = vadd.f32 %v1247_v21, %v1697_v48 }
 0x152   :  { %v306_v23 = vadd.f32 %v1697_v48, %v305_v22 }
 0x154   :  { %v1250_v25 = vpop.f32.mrb[20].mxu0  ;;  %1373 = vmatprep.mubr.f32.mxu1 %v306_v23 }
 0x155   :  { %v315_v26 = vpop.f32.mrb[21].mxu0  ;;  %1374 = vmatmul.mubr.f32.gmra.mrb[18].mxu1 %v311_v24  ;;  %v321_v28 = vadd.f32 %v1250_v25, %v1697_v48 }
 0x156   :  { %v316_v27 = vadd.f32 %v1697_v48, %v315_v26 }
 0x158   :  { %v1253_v29 = vpop.f32.mrb[22].mxu0  ;;  %1376 = vmatprep.mubr.f32.mxu1 %v316_v27 }
 0x159   :  { %v325_v30 = vpop.f32.mrb[23].mxu0  ;;  %1377 = vmatmul.mubr.f32.gmra.mrb[20].mxu1 %v321_v28  ;;  %v331_v32 = vadd.f32 %v1253_v29, %v1697_v48 }
 0x15a   :  { %v326_v31 = vadd.f32 %v1697_v48, %v325_v30 }
 0x15c   :  { %v1256_v33 = vpop.f32.mrb[24].mxu0  ;;  %1379 = vmatprep.mubr.f32.mxu1 %v326_v31 }
 0x15d   :  { %v335_v34 = vpop.f32.mrb[25].mxu0  ;;  %1380 = vmatmul.mubr.f32.gmra.mrb[22].mxu1 %v331_v32  ;;  %v341_v36 = vadd.f32 %v1256_v33, %v1697_v48 }
 0x15e   :  { %v336_v35 = vadd.f32 %v1697_v48, %v335_v34 }
 0x160   :  { %v1259_v37 = vpop.f32.mrb[26].mxu0  ;;  %1382 = vmatprep.mubr.f32.mxu1 %v336_v35 }
 0x161   :  { %v345_v38 = vpop.f32.mrb[27].mxu0  ;;  %1383 = vmatmul.mubr.f32.gmra.mrb[24].mxu1 %v341_v36  ;;  %v351_v40 = vadd.f32 %v1259_v37, %v1697_v48 }
 0x162   :  { %v346_v39 = vadd.f32 %v1697_v48, %v345_v38 }
 0x164   :  { %v1262_v41 = vpop.f32.mrb[28].mxu0  ;;  %1385 = vmatprep.mubr.f32.mxu1 %v346_v39 }
 0x165   :  { %v355_v42 = vpop.f32.mrb[29].mxu0  ;;  %1386 = vmatmul.mubr.f32.gmra.mrb[26].mxu1 %v351_v40  ;;  %v361_v44 = vadd.f32 %v1262_v41, %v1697_v48 }
 0x166   :  { %v356_v43 = vadd.f32 %v1697_v48, %v355_v42 }
 0x168   :  { %v1265_v45 = vpop.f32.mrb[30].mxu0  ;;  %1388 = vmatprep.mubr.f32.mxu1 %v356_v43 }
 0x169   :  { %v365_v46 = vpop.f32.mrb[31].mxu0  ;;  %1389 = vmatmul.mubr.f32.gmra.mrb[28].mxu1 %v361_v44  ;;  %v371_v49 = vadd.f32 %v1265_v45, %v1697_v48 }
 0x16a   :  { %v366_v47 = vadd.f32 %v1697_v48, %v365_v46 }
 0x16c   :  { %v1268_v50 = vpop.f32.mrb[32].mxu0  ;;  %1391 = vmatprep.mubr.f32.mxu1 %v366_v47 }
 0x16d   :  { %v375_v51 = vpop.f32.mrb[33].mxu0  ;;  %1392 = vmatmul.mubr.f32.gmra.mrb[30].mxu1 %v371_v49  ;;  %v381_v53 = vadd.f32 %v1268_v50, %v1697_v48 }
 0x16e   :  { %v376_v52 = vadd.f32 %v1697_v48, %v375_v51  ;;  %v1766_v51 = vld [vmem:[%s1851_s4] ss:$0 sm:$0xff]  ;;  %s1611_s4 = smov [#allocation8]  }
 0x16f   :  { %s1011_s8 = sshll.u32 %s1611_s4, 4  ;;  %s1012_s8 = int_to_ptr.vmem [resolvable:$true] %s1011_s8 }
 0x170   :  { %v1271_v54 = vpop.f32.mrb[34].mxu0  ;;  %1394 = vmatprep.mubr.f32.mxu1 %v376_v52  ;;  %s1578_s9 = scalar_lea.vmem %s1012_s8, 8192  ;;  %p1583_p11 = scmp.lt.s32.totalorder %s1012_s8, %s1012_s8 }
 0x171   :  { %v385_v55 = vpop.f32.mrb[35].mxu0  ;;  %1395 = vmatmul.mubr.f32.gmra.mrb[32].mxu1 %v381_v53  ;;  %v391_v57 = vadd.f32 %v1271_v54, %v1697_v48  ;;  %p1579_p10 = scmp.ne.s32.totalorder %s1012_s8, %s1578_s9  ;;  %p1584_p12 = scmp.lt.s32.totalorder %s1578_s9, %s1578_s9 }
 0x172   :  { %v386_v56 = vadd.f32 %v1697_v48, %v385_v55 }
 0x173   :  { %p1585_p13 = por %p1584_p12, %p1583_p11 }
 0x174   :  { %v1274_v58 = vpop.f32.mrb[36].mxu0  ;;  %1397 = vmatprep.mubr.f32.mxu1 %v386_v56 }
 0x175   :  { %v395_v59 = vpop.f32.mrb[37].mxu0  ;;  %1398 = vmatmul.mubr.f32.gmra.mrb[34].mxu1 %v391_v57  ;;  %v401_v61 = vadd.f32 %v1274_v58, %v1697_v48  ;;  %p1586_p0 = pnand %p1585_p13, %p1579_p10 }
 0x176   :  { %v396_v60 = vadd.f32 %v1697_v48, %v395_v59 }
 0x178   :  { %v1277_v62 = vpop.f32.mrb[38].mxu0  ;;  %1400 = vmatprep.mubr.f32.mxu1 %v396_v60 }
 0x179   :  { %v405_v63 = vpop.f32.mrb[39].mxu0  ;;  %1401 = vmatmul.mubr.f32.gmra.mrb[36].mxu1 %v401_v61  ;;  %v411_v1 = vadd.f32 %v1277_v62, %v1697_v48 }
 0x17a   :  { %v406_v0 = vadd.f32 %v1697_v48, %v405_v63 }
 0x17c   :  { %v1280_v2 = vpop.f32.mrb[40].mxu0  ;;  %1403 = vmatprep.mubr.f32.mxu1 %v406_v0 }
 0x17d   :  { %v415_v3 = vpop.f32.mrb[41].mxu0  ;;  %1404 = vmatmul.mubr.f32.gmra.mrb[38].mxu1 %v411_v1  ;;  %v421_v5 = vadd.f32 %v1280_v2, %v1697_v48 }
 0x17e   :  { %v416_v4 = vadd.f32 %v1697_v48, %v415_v3 }
 0x180   :  { %v1283_v6 = vpop.f32.mrb[42].mxu0  ;;  %1406 = vmatprep.mubr.f32.mxu1 %v416_v4 }
 0x181   :  { %v425_v7 = vpop.f32.mrb[43].mxu0  ;;  %1407 = vmatmul.mubr.f32.gmra.mrb[40].mxu1 %v421_v5  ;;  %v431_v9 = vadd.f32 %v1283_v6, %v1697_v48 }
 0x182   :  { %v426_v8 = vadd.f32 %v1697_v48, %v425_v7 }
 0x184   :  { %v1286_v10 = vpop.f32.mrb[44].mxu0  ;;  %1409 = vmatprep.mubr.f32.mxu1 %v426_v8 }
 0x185   :  { %v435_v11 = vpop.f32.mrb[45].mxu0  ;;  %1410 = vmatmul.mubr.f32.gmra.mrb[42].mxu1 %v431_v9  ;;  %v441_v13 = vadd.f32 %v1286_v10, %v1697_v48 }
 0x186   :  { %v436_v12 = vadd.f32 %v1697_v48, %v435_v11 }
 0x188   :  { %v1289_v14 = vpop.f32.mrb[46].mxu0  ;;  %1412 = vmatprep.mubr.f32.mxu1 %v436_v12 }
 0x189   :  { %v445_v15 = vpop.f32.mrb[47].mxu0  ;;  %1413 = vmatmul.mubr.f32.gmra.mrb[44].mxu1 %v441_v13  ;;  %v451_v17 = vadd.f32 %v1289_v14, %v1697_v48 }
 0x18a   :  { %v446_v16 = vadd.f32 %v1697_v48, %v445_v15 }
 0x18c   :  { %v1292_v18 = vpop.f32.mrb[48].mxu0  ;;  %1415 = vmatprep.mubr.f32.mxu1 %v446_v16 }
 0x18d   :  { %v455_v19 = vpop.f32.mrb[49].mxu0  ;;  %1416 = vmatmul.mubr.f32.gmra.mrb[46].mxu1 %v451_v17  ;;  %v461_v21 = vadd.f32 %v1292_v18, %v1697_v48 }
 0x18e   :  { %v456_v20 = vadd.f32 %v1697_v48, %v455_v19 }
 0x190   :  { %v1295_v22 = vpop.f32.mrb[50].mxu0  ;;  %1418 = vmatprep.mubr.f32.mxu1 %v456_v20 }
 0x191   :  { %v465_v23 = vpop.f32.mrb[51].mxu0  ;;  %1419 = vmatmul.mubr.f32.gmra.mrb[48].mxu1 %v461_v21  ;;  %v471_v25 = vadd.f32 %v1295_v22, %v1697_v48 }
 0x192   :  { %v466_v24 = vadd.f32 %v1697_v48, %v465_v23 }
 0x194   :  { %v1298_v26 = vpop.f32.mrb[52].mxu0  ;;  %1421 = vmatprep.mubr.f32.mxu1 %v466_v24 }
 0x195   :  { %v475_v27 = vpop.f32.mrb[53].mxu0  ;;  %1422 = vmatmul.mubr.f32.gmra.mrb[50].mxu1 %v471_v25  ;;  %v481_v29 = vadd.f32 %v1298_v26, %v1697_v48 }
 0x196   :  { %v476_v28 = vadd.f32 %v1697_v48, %v475_v27 }
 0x198   :  { %v1301_v30 = vpop.f32.mrb[54].mxu0  ;;  %1424 = vmatprep.mubr.f32.mxu1 %v476_v28 }
 0x199   :  { %v485_v31 = vpop.f32.mrb[55].mxu0  ;;  %1425 = vmatmul.mubr.f32.gmra.mrb[52].mxu1 %v481_v29  ;;  %v491_v33 = vadd.f32 %v1301_v30, %v1697_v48 }
 0x19a   :  { %v486_v32 = vadd.f32 %v1697_v48, %v485_v31 }
 0x19c   :  { %v1304_v34 = vpop.f32.mrb[56].mxu0  ;;  %1427 = vmatprep.mubr.f32.mxu1 %v486_v32 }
 0x19d   :  { %v495_v35 = vpop.f32.mrb[57].mxu0  ;;  %1428 = vmatmul.mubr.f32.gmra.mrb[54].mxu1 %v491_v33  ;;  %v501_v37 = vadd.f32 %v1304_v34, %v1697_v48 }
 0x19e   :  { %v496_v36 = vadd.f32 %v1697_v48, %v495_v35 }
 0x1a0   :  { %v1307_v38 = vpop.f32.mrb[58].mxu0  ;;  %1430 = vmatprep.mubr.f32.mxu1 %v496_v36 }
 0x1a1   :  { %v505_v39 = vpop.f32.mrb[59].mxu0  ;;  %1431 = vmatmul.mubr.f32.gmra.mrb[56].mxu1 %v501_v37  ;;  %v511_v41 = vadd.f32 %v1307_v38, %v1697_v48 }
 0x1a2   :  { %v506_v40 = vadd.f32 %v1697_v48, %v505_v39 }
 0x1a4   :  { %v1310_v42 = vpop.f32.mrb[60].mxu0  ;;  %1433 = vmatprep.mubr.f32.mxu1 %v506_v40 }
 0x1a5   :  { %v515_v43 = vpop.f32.mrb[61].mxu0  ;;  %1434 = vmatmul.mubr.f32.gmra.mrb[58].mxu1 %v511_v41  ;;  %v521_v45 = vadd.f32 %v1310_v42, %v1697_v48 }
 0x1a6   :  { %v516_v44 = vadd.f32 %v1697_v48, %v515_v43 }
 0x1a8   :  { %v1313_v46 = vpop.f32.mrb[62].mxu0  ;;  %1436 = vmatprep.mubr.f32.mxu1 %v516_v44 }
 0x1a9   :  { %v525_v47 = vpop.f32.mrb[63].mxu0  ;;  %1437 = vmatmul.mubr.f32.gmra.mrb[60].mxu1 %v521_v45  ;;  %v531_v50 = vadd.f32 %v1313_v46, %v1697_v48 }
 0x1aa   :  { %v526_v49 = vadd.f32 %v1697_v48, %v525_v47 }
 0x1ac   :  { %1439 = vmatprep.mubr.f32.mxu1 %v526_v49 }
 0x1ad   :  { %1440 = vmatmul.mubr.f32.gmra.mrb[62].mxu1 %v531_v50 }
 0x204   :  { %v1348_v52 = vpop.f32.mrb[0].mxu1 }
 0x205   :  { %v629_v53 = vadd.f32 %v1348_v52, %v1766_v51  ;;  %v623_v54 = vpop.f32.mrb[1].mxu1 }
 0x206   :  { %v624_v55 = vadd.f32 %v1766_v51, %v623_v54 }
 0x207   :  { %943 = vst [vmem:[#allocation8 + $0x8] sm:$0xff] %v629_v53 }
 0x208   :  { %942 = vst [vmem:[#allocation8] sm:$0xff] %v624_v55  ;;  %v1351_v56 = vpop.f32.mrb[2].mxu1 }
 0x209   :  { %v639_v57 = vadd.f32 %v1351_v56, %v1766_v51  ;;  %v633_v58 = vpop.f32.mrb[3].mxu1 }
 0x20a   :  { %v634_v48 = vadd.f32 %v1766_v51, %v633_v58 }
 0x20b   :  { %945 = vst [vmem:[#allocation8 + $0x18] sm:$0xff] %v639_v57 }
 0x20c   :  { %944 = vst [vmem:[#allocation8 + $0x10] sm:$0xff] %v634_v48  ;;  %v1354_v59 = vpop.f32.mrb[4].mxu1 }
 0x20d   :  { %v649_v60 = vadd.f32 %v1354_v59, %v1766_v51  ;;  %v643_v61 = vpop.f32.mrb[5].mxu1 }
 0x20e   :  { %v644_v62 = vadd.f32 %v1766_v51, %v643_v61 }
 0x20f   :  { %947 = vst [vmem:[#allocation8 + $0x28] sm:$0xff] %v649_v60 }
 0x210   :  { %946 = vst [vmem:[#allocation8 + $0x20] sm:$0xff] %v644_v62  ;;  %v1357_v63 = vpop.f32.mrb[6].mxu1 }
 0x211   :  { %v659_v0 = vadd.f32 %v1357_v63, %v1766_v51  ;;  %v653_v1 = vpop.f32.mrb[7].mxu1 }
 0x212   :  { %v654_v2 = vadd.f32 %v1766_v51, %v653_v1 }
 0x213   :  { %949 = vst [vmem:[#allocation8 + $0x38] sm:$0xff] %v659_v0 }
 0x214   :  { %948 = vst [vmem:[#allocation8 + $0x30] sm:$0xff] %v654_v2  ;;  %v1360_v3 = vpop.f32.mrb[8].mxu1 }
 0x215   :  { %v669_v4 = vadd.f32 %v1360_v3, %v1766_v51  ;;  %v663_v5 = vpop.f32.mrb[9].mxu1 }
 0x216   :  { %v664_v6 = vadd.f32 %v1766_v51, %v663_v5 }
 0x217   :  { %951 = vst [vmem:[#allocation8 + $0x48] sm:$0xff] %v669_v4 }
 0x218   :  { %950 = vst [vmem:[#allocation8 + $0x40] sm:$0xff] %v664_v6  ;;  %v1363_v7 = vpop.f32.mrb[10].mxu1 }
 0x219   :  { %v679_v8 = vadd.f32 %v1363_v7, %v1766_v51  ;;  %v673_v9 = vpop.f32.mrb[11].mxu1 }
 0x21a   :  { %v674_v10 = vadd.f32 %v1766_v51, %v673_v9 }
 0x21b   :  { %953 = vst [vmem:[#allocation8 + $0x58] sm:$0xff] %v679_v8 }
 0x21c   :  { %952 = vst [vmem:[#allocation8 + $0x50] sm:$0xff] %v674_v10  ;;  %v1366_v11 = vpop.f32.mrb[12].mxu1 }
 0x21d   :  { %v689_v12 = vadd.f32 %v1366_v11, %v1766_v51  ;;  %v683_v13 = vpop.f32.mrb[13].mxu1 }
 0x21e   :  { %v684_v14 = vadd.f32 %v1766_v51, %v683_v13 }
 0x21f   :  { %955 = vst [vmem:[#allocation8 + $0x68] sm:$0xff] %v689_v12 }
 0x220   :  { %954 = vst [vmem:[#allocation8 + $0x60] sm:$0xff] %v684_v14  ;;  %v1369_v15 = vpop.f32.mrb[14].mxu1 }
 0x221   :  { %v699_v16 = vadd.f32 %v1369_v15, %v1766_v51  ;;  %v693_v17 = vpop.f32.mrb[15].mxu1 }
 0x222   :  { %v694_v18 = vadd.f32 %v1766_v51, %v693_v17 }
 0x223   :  { %957 = vst [vmem:[#allocation8 + $0x78] sm:$0xff] %v699_v16 }
 0x224   :  { %956 = vst [vmem:[#allocation8 + $0x70] sm:$0xff] %v694_v18  ;;  %v1372_v19 = vpop.f32.mrb[16].mxu1 }
 0x225   :  { %v709_v20 = vadd.f32 %v1372_v19, %v1766_v51  ;;  %v703_v21 = vpop.f32.mrb[17].mxu1 }
 0x226   :  { %v704_v22 = vadd.f32 %v1766_v51, %v703_v21 }
 0x227   :  { %959 = vst [vmem:[#allocation8 + $0x88] sm:$0xff] %v709_v20 }
 0x228   :  { %958 = vst [vmem:[#allocation8 + $0x80] sm:$0xff] %v704_v22  ;;  %v1375_v23 = vpop.f32.mrb[18].mxu1 }
 0x229   :  { %v719_v24 = vadd.f32 %v1375_v23, %v1766_v51  ;;  %v713_v25 = vpop.f32.mrb[19].mxu1 }
 0x22a   :  { %v714_v26 = vadd.f32 %v1766_v51, %v713_v25 }
 0x22b   :  { %961 = vst [vmem:[#allocation8 + $0x98] sm:$0xff] %v719_v24 }
 0x22c   :  { %960 = vst [vmem:[#allocation8 + $0x90] sm:$0xff] %v714_v26  ;;  %v1378_v27 = vpop.f32.mrb[20].mxu1 }
 0x22d   :  { %v729_v28 = vadd.f32 %v1378_v27, %v1766_v51  ;;  %v723_v29 = vpop.f32.mrb[21].mxu1 }
 0x22e   :  { %v724_v30 = vadd.f32 %v1766_v51, %v723_v29 }
 0x22f   :  { %963 = vst [vmem:[#allocation8 + $0xa8] sm:$0xff] %v729_v28 }
 0x230   :  { %962 = vst [vmem:[#allocation8 + $0xa0] sm:$0xff] %v724_v30  ;;  %v1381_v31 = vpop.f32.mrb[22].mxu1 }
 0x231   :  { %v739_v32 = vadd.f32 %v1381_v31, %v1766_v51  ;;  %v733_v33 = vpop.f32.mrb[23].mxu1 }
 0x232   :  { %v734_v34 = vadd.f32 %v1766_v51, %v733_v33 }
 0x233   :  { %965 = vst [vmem:[#allocation8 + $0xb8] sm:$0xff] %v739_v32 }
 0x234   :  { %964 = vst [vmem:[#allocation8 + $0xb0] sm:$0xff] %v734_v34  ;;  %v1384_v35 = vpop.f32.mrb[24].mxu1 }
 0x235   :  { %v749_v36 = vadd.f32 %v1384_v35, %v1766_v51  ;;  %v743_v37 = vpop.f32.mrb[25].mxu1 }
 0x236   :  { %v744_v38 = vadd.f32 %v1766_v51, %v743_v37 }
 0x237   :  { %967 = vst [vmem:[#allocation8 + $0xc8] sm:$0xff] %v749_v36 }
 0x238   :  { %966 = vst [vmem:[#allocation8 + $0xc0] sm:$0xff] %v744_v38  ;;  %v1387_v39 = vpop.f32.mrb[26].mxu1 }
 0x239   :  { %v759_v40 = vadd.f32 %v1387_v39, %v1766_v51  ;;  %v753_v41 = vpop.f32.mrb[27].mxu1 }
 0x23a   :  { %v754_v42 = vadd.f32 %v1766_v51, %v753_v41 }
 0x23b   :  { %969 = vst [vmem:[#allocation8 + $0xd8] sm:$0xff] %v759_v40 }
 0x23c   :  { %968 = vst [vmem:[#allocation8 + $0xd0] sm:$0xff] %v754_v42  ;;  %v1390_v43 = vpop.f32.mrb[28].mxu1 }
 0x23d   :  { %v769_v44 = vadd.f32 %v1390_v43, %v1766_v51  ;;  %v763_v45 = vpop.f32.mrb[29].mxu1 }
 0x23e   :  { %v764_v46 = vadd.f32 %v1766_v51, %v763_v45 }
 0x23f   :  { %971 = vst [vmem:[#allocation8 + $0xe8] sm:$0xff] %v769_v44 }
 0x240   :  { %970 = vst [vmem:[#allocation8 + $0xe0] sm:$0xff] %v764_v46  ;;  %v1393_v47 = vpop.f32.mrb[30].mxu1 }
 0x241   :  { %v779_v49 = vadd.f32 %v1393_v47, %v1766_v51  ;;  %v773_v50 = vpop.f32.mrb[31].mxu1 }
 0x242   :  { %v774_v52 = vadd.f32 %v1766_v51, %v773_v50 }
 0x243   :  { %973 = vst [vmem:[#allocation8 + $0xf8] sm:$0xff] %v779_v49 }
 0x244   :  { %972 = vst [vmem:[#allocation8 + $0xf0] sm:$0xff] %v774_v52  ;;  %v1396_v53 = vpop.f32.mrb[32].mxu1 }
 0x245   :  { %v789_v54 = vadd.f32 %v1396_v53, %v1766_v51  ;;  %v783_v55 = vpop.f32.mrb[33].mxu1 }
 0x246   :  { %v784_v56 = vadd.f32 %v1766_v51, %v783_v55 }
 0x247   :  { %975 = vst [vmem:[#allocation8 + $0x108] sm:$0xff] %v789_v54 }
 0x248   :  { %974 = vst [vmem:[#allocation8 + $0x100] sm:$0xff] %v784_v56  ;;  %v1399_v57 = vpop.f32.mrb[34].mxu1 }
 0x249   :  { %v799_v58 = vadd.f32 %v1399_v57, %v1766_v51  ;;  %v793_v48 = vpop.f32.mrb[35].mxu1 }
 0x24a   :  { %v794_v59 = vadd.f32 %v1766_v51, %v793_v48 }
 0x24b   :  { %977 = vst [vmem:[#allocation8 + $0x118] sm:$0xff] %v799_v58 }
 0x24c   :  { %976 = vst [vmem:[#allocation8 + $0x110] sm:$0xff] %v794_v59  ;;  %v1402_v60 = vpop.f32.mrb[36].mxu1 }
 0x24d   :  { %v809_v61 = vadd.f32 %v1402_v60, %v1766_v51  ;;  %v803_v62 = vpop.f32.mrb[37].mxu1 }
 0x24e   :  { %v804_v63 = vadd.f32 %v1766_v51, %v803_v62 }
 0x24f   :  { %979 = vst [vmem:[#allocation8 + $0x128] sm:$0xff] %v809_v61 }
 0x250   :  { %978 = vst [vmem:[#allocation8 + $0x120] sm:$0xff] %v804_v63  ;;  %v1405_v0 = vpop.f32.mrb[38].mxu1 }
 0x251   :  { %v819_v1 = vadd.f32 %v1405_v0, %v1766_v51  ;;  %v813_v2 = vpop.f32.mrb[39].mxu1 }
 0x252   :  { %v814_v3 = vadd.f32 %v1766_v51, %v813_v2 }
 0x253   :  { %981 = vst [vmem:[#allocation8 + $0x138] sm:$0xff] %v819_v1 }
 0x254   :  { %980 = vst [vmem:[#allocation8 + $0x130] sm:$0xff] %v814_v3  ;;  %v1408_v4 = vpop.f32.mrb[40].mxu1 }
 0x255   :  { %v829_v5 = vadd.f32 %v1408_v4, %v1766_v51  ;;  %v823_v6 = vpop.f32.mrb[41].mxu1 }
 0x256   :  { %v824_v7 = vadd.f32 %v1766_v51, %v823_v6 }
 0x257   :  { %983 = vst [vmem:[#allocation8 + $0x148] sm:$0xff] %v829_v5 }
 0x258   :  { %982 = vst [vmem:[#allocation8 + $0x140] sm:$0xff] %v824_v7  ;;  %v1411_v8 = vpop.f32.mrb[42].mxu1 }
 0x259   :  { %v839_v9 = vadd.f32 %v1411_v8, %v1766_v51  ;;  %v833_v10 = vpop.f32.mrb[43].mxu1 }
 0x25a   :  { %v834_v11 = vadd.f32 %v1766_v51, %v833_v10 }
 0x25b   :  { %985 = vst [vmem:[#allocation8 + $0x158] sm:$0xff] %v839_v9 }
 0x25c   :  { %984 = vst [vmem:[#allocation8 + $0x150] sm:$0xff] %v834_v11  ;;  %v1414_v12 = vpop.f32.mrb[44].mxu1 }
 0x25d   :  { %v849_v13 = vadd.f32 %v1414_v12, %v1766_v51  ;;  %v843_v14 = vpop.f32.mrb[45].mxu1 }
 0x25e   :  { %v844_v15 = vadd.f32 %v1766_v51, %v843_v14 }
 0x25f   :  { %987 = vst [vmem:[#allocation8 + $0x168] sm:$0xff] %v849_v13 }
 0x260   :  { %986 = vst [vmem:[#allocation8 + $0x160] sm:$0xff] %v844_v15  ;;  %v1417_v16 = vpop.f32.mrb[46].mxu1 }
 0x261   :  { %v859_v17 = vadd.f32 %v1417_v16, %v1766_v51  ;;  %v853_v18 = vpop.f32.mrb[47].mxu1 }
 0x262   :  { %v854_v19 = vadd.f32 %v1766_v51, %v853_v18 }
 0x263   :  { %989 = vst [vmem:[#allocation8 + $0x178] sm:$0xff] %v859_v17 }
 0x264   :  { %988 = vst [vmem:[#allocation8 + $0x170] sm:$0xff] %v854_v19  ;;  %v1420_v20 = vpop.f32.mrb[48].mxu1 }
 0x265   :  { %v869_v21 = vadd.f32 %v1420_v20, %v1766_v51  ;;  %v863_v22 = vpop.f32.mrb[49].mxu1 }
 0x266   :  { %v864_v23 = vadd.f32 %v1766_v51, %v863_v22 }
 0x267   :  { %991 = vst [vmem:[#allocation8 + $0x188] sm:$0xff] %v869_v21 }
 0x268   :  { %990 = vst [vmem:[#allocation8 + $0x180] sm:$0xff] %v864_v23  ;;  %v1423_v24 = vpop.f32.mrb[50].mxu1 }
 0x269   :  { %v879_v25 = vadd.f32 %v1423_v24, %v1766_v51  ;;  %v873_v26 = vpop.f32.mrb[51].mxu1 }
 0x26a   :  { %v874_v27 = vadd.f32 %v1766_v51, %v873_v26 }
 0x26b   :  { %993 = vst [vmem:[#allocation8 + $0x198] sm:$0xff] %v879_v25 }
 0x26c   :  { %992 = vst [vmem:[#allocation8 + $0x190] sm:$0xff] %v874_v27  ;;  %v1426_v28 = vpop.f32.mrb[52].mxu1 }
 0x26d   :  { %v889_v29 = vadd.f32 %v1426_v28, %v1766_v51  ;;  %v883_v30 = vpop.f32.mrb[53].mxu1 }
 0x26e   :  { %v884_v31 = vadd.f32 %v1766_v51, %v883_v30 }
 0x26f   :  { %995 = vst [vmem:[#allocation8 + $0x1a8] sm:$0xff] %v889_v29 }
 0x270   :  { %994 = vst [vmem:[#allocation8 + $0x1a0] sm:$0xff] %v884_v31  ;;  %v1429_v32 = vpop.f32.mrb[54].mxu1 }
 0x271   :  { %v899_v33 = vadd.f32 %v1429_v32, %v1766_v51  ;;  %v893_v34 = vpop.f32.mrb[55].mxu1 }
 0x272   :  { %v894_v35 = vadd.f32 %v1766_v51, %v893_v34 }
 0x273   :  { %997 = vst [vmem:[#allocation8 + $0x1b8] sm:$0xff] %v899_v33 }
 0x274   :  { %996 = vst [vmem:[#allocation8 + $0x1b0] sm:$0xff] %v894_v35  ;;  %v1432_v36 = vpop.f32.mrb[56].mxu1 }
 0x275   :  { %v909_v37 = vadd.f32 %v1432_v36, %v1766_v51  ;;  %v903_v38 = vpop.f32.mrb[57].mxu1 }
 0x276   :  { %v904_v39 = vadd.f32 %v1766_v51, %v903_v38 }
 0x277   :  { %999 = vst [vmem:[#allocation8 + $0x1c8] sm:$0xff] %v909_v37 }
 0x278   :  { %998 = vst [vmem:[#allocation8 + $0x1c0] sm:$0xff] %v904_v39  ;;  %v1435_v40 = vpop.f32.mrb[58].mxu1 }
 0x279   :  { %v919_v41 = vadd.f32 %v1435_v40, %v1766_v51  ;;  %v913_v42 = vpop.f32.mrb[59].mxu1 }
 0x27a   :  { %v914_v43 = vadd.f32 %v1766_v51, %v913_v42 }
 0x27b   :  { %1001 = vst [vmem:[#allocation8 + $0x1d8] sm:$0xff] %v919_v41 }
 0x27c   :  { %1000 = vst [vmem:[#allocation8 + $0x1d0] sm:$0xff] %v914_v43  ;;  %v1438_v44 = vpop.f32.mrb[60].mxu1 }
 0x27d   :  { %v929_v45 = vadd.f32 %v1438_v44, %v1766_v51  ;;  %v923_v46 = vpop.f32.mrb[61].mxu1 }
 0x27e   :  { %v924_v47 = vadd.f32 %v1766_v51, %v923_v46 }
 0x27f   :  { %1003 = vst [vmem:[#allocation8 + $0x1e8] sm:$0xff] %v929_v45 }
 0x280   :  { %1002 = vst [vmem:[#allocation8 + $0x1e0] sm:$0xff] %v924_v47  ;;  %v1441_v49 = vpop.f32.mrb[62].mxu1 }
 0x281   :  { %v939_v50 = vadd.f32 %v1441_v49, %v1766_v51  ;;  %v933_v52 = vpop.f32.mrb[63].mxu1 }
 0x282   :  { %v934_v53 = vadd.f32 %v1766_v51, %v933_v52 }
 0x283   :  { %1005 = vst [vmem:[#allocation8 + $0x1f8] sm:$0xff] %v939_v50 }
 0x284   :  { %1004 = vst [vmem:[#allocation8 + $0x1f0] sm:$0xff] %v934_v53 }
 0x285   :  { %1589 = shalt.err (!%p1586_p0)
}
 0x286   :  { %s1590_s12 = scalar_lea.hbm %s1852_s5, 8192 }
 0x287   :  { %p1591_p1 = scmp.ne.s32.totalorder %s1852_s5, %s1590_s12  ;;  %p1594_p2 = scmp.lt.u32.totalorder %s1590_s12, %s1852_s5 }
 0x289   :  { %p1596_p3 = pnand %p1594_p2, %p1591_p1 }
 0x28b   :  { %1599 = shalt.err (!%p1596_p3)
}
 0x28c   :  { %1017 = dma.vmem_to_hbm [thread:$0]  %s1012_s8, 8192, %s1852_s5, [#allocation4], %s1608_s30, %s1608_s30, %s1609_s6  }
 0x28d   :  { %1604 = dma.done.wait [#allocation4], 8192  }
 0x28e   :  { %1605 = vsyncadd [#allocation4], 4294959104 }
 0x28f   :  { %1021 = vsyncpa [#allocation3], 1 }
 0x290   :  { %1022 = vsyncpa [#allocation6], 1 }
 0x291   :  { %1023 = vsyncpa [#allocation4], 1 }

</bundles_post_ra>
